<compile_context>
chip_gen: v7x
topology: tpu7x:2x2x1
jax: 0.10.0
libtpu: 0.0.40
codegen_flags: <defaults>
</compile_context>

<pallas_src>
import functools

import jax
import jax.numpy as jnp
from jax.experimental import pallas as pl
from jax.experimental.pallas import tpu as pltpu

BN_EPS = 1e-5
LANE = 128

_VMEM_LIMIT = 48 << 20          # scoped-VMEM limit requested from Mosaic (fits v7x 64 MiB)
_TILED_VMEM_BUDGET = 36 << 20   # what the tile-size heuristic is allowed to plan against
_FUSED_VMEM_BUDGET = 36 << 20   # take the fully fused path only below this footprint


# ----------------------------- kernels ---------------------------------------


def _fused_mlp_kernel(*refs, n_hidden, relu_out):
    """Whole MLP in one kernel: everything VMEM-resident, layers looped in-kernel.

    refs = (x, w0, [g0, be0, w1], [g1, be1, w2], ..., b_last, out)
    """
    x_ref, o_ref = refs[0], refs[-1]
    p = refs[1:-1]

    a = jnp.dot(x_ref[...].astype(jnp.bfloat16), p[0][...],
                preferred_element_type=jnp.float32)
    idx = 1
    for _ in range(n_hidden):
        g, be, w = p[idx][...], p[idx + 1][...], p[idx + 2][...]
        idx += 3
        mean = jnp.mean(a, axis=0, keepdims=True)
        var = jnp.mean((a - mean) * (a - mean), axis=0, keepdims=True)  # two-pass, stable
        scale = g * jax.lax.rsqrt(var + BN_EPS)        # folded gamma * inv_std (EUP)
        h = jnp.maximum((a - mean) * scale + be, 0.0)  # BN + ReLU in f32
        a = jnp.dot(h.astype(jnp.bfloat16), w, preferred_element_type=jnp.float32)

    out = a + p[idx][...]                              # final Linear bias
    if relu_out:
        out = jnp.maximum(out, 0.0)
    o_ref[...] = out.astype(o_ref.dtype)


def _linear_stats_kernel(x_ref, w_ref, a_ref, stat_ref):
    """a = x @ W (bf16 operands, f32 acc); emit per-tile feature sum / sum-of-squares."""
    a = jnp.dot(x_ref[...].astype(jnp.bfloat16), w_ref[...],
                preferred_element_type=jnp.float32)
    a_ref[...] = a.astype(a_ref.dtype)                 # bf16 inter-layer activation
    s = jnp.sum(a, axis=0, keepdims=True)
    q = jnp.sum(a * a, axis=0, keepdims=True)
    stat_ref[...] = jnp.concatenate([s, q], axis=0)[None]     # (1, 2, H) per-tile partial


def _bn_relu_linear_stats_kernel(a_ref, stats_ref, g_ref, be_ref, w_ref,
                                 a2_ref, stat2_ref, *, inv_n):
    """h = relu(BN(a)); a2 = h @ W; emit per-tile stats of a2 for the next BN layer."""
    stats = jnp.sum(stats_ref[...], axis=0)            # reduce (nt, 2, H) -> (2, H)
    mean = stats[0:1] * inv_n
    var = jnp.maximum(stats[1:2] * inv_n - mean * mean, 0.0)
    scale = g_ref[...] * jax.lax.rsqrt(var + BN_EPS)
    shift = be_ref[...] - mean * scale
    h = jnp.maximum(a_ref[...].astype(jnp.float32) * scale + shift, 0.0)

    a2 = jnp.dot(h.astype(jnp.bfloat16), w_ref[...], preferred_element_type=jnp.float32)
    a2_ref[...] = a2.astype(a2_ref.dtype)
    s = jnp.sum(a2, axis=0, keepdims=True)
    q = jnp.sum(a2 * a2, axis=0, keepdims=True)
    stat2_ref[...] = jnp.concatenate([s, q], axis=0)[None]


def _bn_relu_linear_out_kernel(a_ref, stats_ref, g_ref, be_ref, w_ref, b_ref, o_ref,
                               *, inv_n, relu_out):
    """h = relu(BN(a)); out = h @ W + b  (optionally ReLU for last_layer_act='ReLU')."""
    stats = jnp.sum(stats_ref[...], axis=0)
    mean = stats[0:1] * inv_n
    var = jnp.maximum(stats[1:2] * inv_n - mean * mean, 0.0)
    scale = g_ref[...] * jax.lax.rsqrt(var + BN_EPS)
    shift = be_ref[...] - mean * scale
    h = jnp.maximum(a_ref[...].astype(jnp.float32) * scale + shift, 0.0)

    out = jnp.dot(h.astype(jnp.bfloat16), w_ref[...],
                  preferred_element_type=jnp.float32) + b_ref[...]
    if relu_out:
        out = jnp.maximum(out, 0.0)
    o_ref[...] = out.astype(o_ref.dtype)


# ----------------------------- param preparation ------------------------------


def _round_up(n, m):
    return ((n + m - 1) // m) * m


def _pad2(a, rows, cols):
    a = jnp.asarray(a, jnp.float32)
    if a.ndim == 1:
        a = a.reshape(1, -1)
    pr, pc = rows - a.shape[0], cols - a.shape[1]
    if pr or pc:
        a = jnp.pad(a, ((0, pr), (0, pc)))
    return a


def prepare_mlp_params(params):
    """Pad to 128 lanes and cast weights to bf16 ONCE (hoisted out of the forward).

    params: flat tuple (w1, b1, g1, be1, ..., w_{L-1}, b_{L-1}, g_{L-1}, be_{L-1}, wL, bL)
    with weights stored [in_features, out_features] (transposed vs. PyTorch).
    Hidden-layer biases are dropped (cancelled by the following BN mean subtraction).
    Returns (prepped_pytree, out_dim).
    """
    assert len(params) >= 6 and (len(params) - 2) % 4 == 0, "need >= 2 linear layers"
    n_hidden = (len(params) - 2) // 4

    w_list, g_list, be_list = [], [], []
    prev = params[0].shape[0]                      # input feature width (unpadded)
    for s in range(n_hidden):
        w, _b, g, be = params[4 * s: 4 * s + 4]
        hp = _round_up(w.shape[1], LANE)
        w_list.append(_pad2(w, prev, hp).astype(jnp.bfloat16))
        g_list.append(_pad2(g, 1, hp))             # zero-padded gamma -> padded cols stay 0
        be_list.append(_pad2(be, 1, hp))
        prev = hp

    w_last, b_last = params[-2], params[-1]
    op = _round_up(w_last.shape[1], LANE)
    w_list.append(_pad2(w_last, prev, op).astype(jnp.bfloat16))
    prepped = {"w": w_list, "g": g_list, "be": be_list,
               "b_last": _pad2(b_last, 1, op)}
    return prepped, int(w_last.shape[1])


def _pick_block_b(b, per_row_bytes, fixed_bytes, cap):
    """Largest multiple of 8 dividing the batch that fits the tiled VMEM budget."""
    avail = max(_TILED_VMEM_BUDGET - fixed_bytes, 1 << 20)
    cap = min(cap, b, max(avail // max(per_row_bytes, 1), 8))
    cap = max(cap - cap % 8, 8)
    for t in range(cap, 7, -8):
        if b % t == 0:
            return t
    return b


# ----------------------------- forward ----------------------------------------


@functools.partial(jax.jit,
                   static_argnames=("out_dim", "last_layer_act", "block_b", "force_tiled"))
def mlp_forward(x, prepped, *, out_dim, last_layer_act="linear",
                block_b=2048, force_tiled=False):
    x = x.astype(jnp.float32)
    B, F = x.shape
    wlist, glist, belist = prepped["w"], prepped["g"], prepped["be"]
    b_last = prepped["b_last"]
    n_hidden = len(glist)
    Hs = [w.shape[1] for w in wlist]               # padded output widths per Linear
    relu_out = last_layer_act == "ReLU"

    # ---- fused small-model path: everything VMEM-resident, single kernel ------
    param_bytes = sum(int(w.size) * 2 for w in wlist) + sum(
        int(a.size) * 4 for a in glist + belist) + int(b_last.size) * 4
    widest = max(Hs + [LANE])
    fused_est = param_bytes + B * max(F, LANE) * 4 + B * Hs[-1] * 4 + 4 * B * widest * 4
    if not force_tiled and fused_est <= _FUSED_VMEM_BUDGET:
        fused_args = [x, wlist[0]]
        for s in range(n_hidden):
            fused_args += [glist[s], belist[s], wlist[s + 1]]
        fused_args.append(b_last)
        out_p = pl.pallas_call(
            functools.partial(_fused_mlp_kernel, n_hidden=n_hidden, relu_out=relu_out),
            out_shape=jax.ShapeDtypeStruct((B, Hs[-1]), jnp.float32),
            compiler_params=pltpu.CompilerParams(vmem_limit_bytes=_VMEM_LIMIT),
        )(*fused_args)
        return out_p[:, :out_dim]

    # ---- tiled large-model fallback: batch-tiled, two-pass BN via tile partials
    widths_in = [F] + Hs[:-1]
    per_row = 0
    for s in range(n_hidden + 1):
        in_b = 4 if s == 0 else 2                  # x is f32, inter-layer acts are bf16
        out_b = 4 if s == n_hidden else 2
        per_row = max(per_row, 2 * (widths_in[s] * in_b + Hs[s] * out_b))
    fixed = 2 * max(int(w.size) * 2 for w in wlist) + (1 << 20)
    TB = _pick_block_b(B, per_row, fixed, block_b)
    grid = (B // TB,)
    nt = B // TB
    inv_n = 1.0 / B

    def row_spec(width):                           # batch-tiled activations
        return pl.BlockSpec((TB, width), lambda i: (i, 0))

    def const_spec(shape):                         # VMEM-resident params / stats
        nd = len(shape)
        return pl.BlockSpec(shape, lambda i, _nd=nd: (0,) * _nd)

    def stat_spec(width):                          # per-tile (sum, sumsq) partials
        return pl.BlockSpec((1, 2, width), lambda i: (i, 0, 0))

    cp = pltpu.CompilerParams(dimension_semantics=("parallel",),
                              vmem_limit_bytes=_VMEM_LIMIT)

    # layer 0: Linear (bias dropped) + per-tile batch-stat partials
    H = Hs[0]
    act, stats = pl.pallas_call(
        _linear_stats_kernel,
        grid=grid,
        in_specs=[row_spec(F), const_spec((F, H))],
        out_specs=[row_spec(H), stat_spec(H)],
        out_shape=[jax.ShapeDtypeStruct((B, H), jnp.bfloat16),
                   jax.ShapeDtypeStruct((nt, 2, H), jnp.float32)],
        compiler_params=cp,
    )(x, wlist[0])

    # middle hidden layers: BN+ReLU of previous pre-act, then next Linear + partials
    for s in range(1, n_hidden):
        Hn = Hs[s]
        act, stats = pl.pallas_call(
            functools.partial(_bn_relu_linear_stats_kernel, inv_n=inv_n),
            grid=grid,
            in_specs=[row_spec(H), const_spec((nt, 2, H)),
                      const_spec((1, H)), const_spec((1, H)), const_spec((H, Hn))],
            out_specs=[row_spec(Hn), stat_spec(Hn)],
            out_shape=[jax.ShapeDtypeStruct((B, Hn), jnp.bfloat16),
                       jax.ShapeDtypeStruct((nt, 2, Hn), jnp.float32)],
            compiler_params=cp,
        )(act, stats, glist[s - 1], belist[s - 1], wlist[s])
        H = Hn

    # last layer: BN+ReLU of final hidden pre-act, then Linear + bias
    Op = Hs[-1]
    out_p = pl.pallas_call(
        functools.partial(_bn_relu_linear_out_kernel, inv_n=inv_n, relu_out=relu_out),
        grid=grid,
        in_specs=[row_spec(H), const_spec((nt, 2, H)),
                  const_spec((1, H)), const_spec((1, H)),
                  const_spec((H, Op)), const_spec((1, Op))],
        out_specs=row_spec(Op),
        out_shape=jax.ShapeDtypeStruct((B, Op), jnp.float32),
        compiler_params=cp,
    )(act, stats, glist[-1], belist[-1], wlist[-1], b_last)

    return out_p[:, :out_dim]                      # drop lane padding of output features


# ----------------------------- init + reference -------------------------------


def init_mlp_params(key, sizes):
    """Mirror the PyTorch module init: Linear.weight ~ kaiming_uniform_
    (bound = sqrt(6/fan_in)), Linear.bias = 0.01, BN gamma = 1, beta = 0."""
    params = []
    n_layers = len(sizes) - 1
    keys = jax.random.split(key, n_layers)
    for s in range(n_layers):
        fan_in, fan_out = sizes[s], sizes[s + 1]
        bound = (6.0 / fan_in) ** 0.5
        w = jax.random.uniform(keys[s], (fan_in, fan_out), jnp.float32,
                               minval=-bound, maxval=bound)   # stored [in, out]
        b = jnp.full((1, fan_out), 0.01, jnp.float32)
        params += [w, b]
        if s < n_layers - 1:                                   # hidden layers carry BN
            params += [jnp.ones((1, fan_out), jnp.float32),
                       jnp.zeros((1, fan_out), jnp.float32)]
    return tuple(params)


def mlp_reference(x, params, *, last_layer_act="linear"):
    """Plain-JAX reference with the same matmul dtype policy (bf16 operands, f32 acc);
    includes the hidden-layer biases that the kernel legitimately drops."""
    def mm(a, w):
        return jnp.dot(a.astype(jnp.bfloat16), w.astype(jnp.bfloat16),
                       preferred_element_type=jnp.float32)

    n_hidden = (len(params) - 2) // 4
    h = x
    for s in range(n_hidden):
        w, b, g, be = params[4 * s: 4 * s + 4]
        h = mm(h, w) + b
        m = h.mean(0, keepdims=True)
        v = ((h - m) ** 2).mean(0, keepdims=True)              # biased batch variance
        h = jnp.maximum((h - m) / jnp.sqrt(v + BN_EPS) * g + be, 0.0)
    out = mm(h, params[-2]) + params[-1]
    if last_layer_act == "ReLU":
        out = jnp.maximum(out, 0.0)
    return out


if __name__ == "__main__":
    sizes = [32, 64, 64, 16]   # MLP(sizes=[32, 64, 64, 16], dropout=0.0, batch_norm=True)
    batch = 512

    key = jax.random.PRNGKey(0)
    kx, kp = jax.random.split(key)
    x = jax.random.normal(kx, (batch, sizes[0]), jnp.float32)
    params = init_mlp_params(kp, sizes)
    prepped, out_dim = prepare_mlp_params(params)          # pad + bf16-cast once

    ref = mlp_reference(x, params)

    # 1) fused small-model path (default at these sizes)
    out = jax.block_until_ready(mlp_forward(x, prepped, out_dim=out_dim))
    assert out.shape == (batch, sizes[-1])
    assert jnp.allclose(out, ref, atol=3e-2, rtol=3e-2), "fused path mismatch vs. reference"

    # 2) tiled fallback path, forced with a small tile so the multi-tile two-pass
    #    BN-stat reduction is exercised (production default uses much larger tiles).
    out_t = jax.block_until_ready(
        mlp_forward(x, prepped, out_dim=out_dim, force_tiled=True, block_b=128))
    assert out_t.shape == (batch, sizes[-1])
    # looser tolerance: bf16 inter-layer activation storage + tiled stat reduction order
    assert jnp.allclose(out_t, ref, atol=5e-2, rtol=5e-2), "tiled path mismatch vs. reference"

    print("KERNEL_OK")
</pallas_src>

<mosaic_0001>
module attributes {stable_mosaic.version = 11 : i64} {
  func.func @_fused_mlp_kernel(%arg0: memref<512x32xf32, #tpu.memory_space<vmem>>, %arg1: memref<32x128xbf16, #tpu.memory_space<vmem>>, %arg2: memref<1x128xf32, #tpu.memory_space<vmem>>, %arg3: memref<1x128xf32, #tpu.memory_space<vmem>>, %arg4: memref<128x128xbf16, #tpu.memory_space<vmem>>, %arg5: memref<1x128xf32, #tpu.memory_space<vmem>>, %arg6: memref<1x128xf32, #tpu.memory_space<vmem>>, %arg7: memref<128x128xbf16, #tpu.memory_space<vmem>>, %arg8: memref<1x128xf32, #tpu.memory_space<vmem>>, %arg9: memref<512x128xf32, #tpu.memory_space<vmem>>) attributes {dimension_semantics = [], scalar_prefetch = 0 : i64, scratch_operands = 0 : i64, tpu.core_type = #tpu.core_type<tc>} {
    %c0 = arith.constant 0 : index
    %c0_0 = arith.constant 0 : index
    %0 = vector.load %arg0[%c0, %c0_0] : memref<512x32xf32, #tpu.memory_space<vmem>>, vector<512x32xf32>
    %1 = arith.truncf %0 : vector<512x32xf32> to vector<512x32xbf16>
    %c0_1 = arith.constant 0 : index
    %c0_2 = arith.constant 0 : index
    %2 = vector.load %arg1[%c0_1, %c0_2] : memref<32x128xbf16, #tpu.memory_space<vmem>>, vector<32x128xbf16>
    %cst = arith.constant dense<0.000000e+00> : vector<512x128xf32>
    %3 = tpu.matmul %1, %2, %cst {dimension_numbers = #tpu.dot_dimension_numbers<[1], [0], [0], [1], [0, 0, 1, 1], [], []>} : vector<512x32xbf16>, vector<32x128xbf16>, vector<512x128xf32> -> vector<512x128xf32>
    %c0_3 = arith.constant 0 : index
    %c0_4 = arith.constant 0 : index
    %4 = vector.load %arg2[%c0_3, %c0_4] : memref<1x128xf32, #tpu.memory_space<vmem>>, vector<1x128xf32>
    %c0_5 = arith.constant 0 : index
    %c0_6 = arith.constant 0 : index
    %5 = vector.load %arg3[%c0_5, %c0_6] : memref<1x128xf32, #tpu.memory_space<vmem>>, vector<1x128xf32>
    %c0_7 = arith.constant 0 : index
    %c0_8 = arith.constant 0 : index
    %6 = vector.load %arg4[%c0_7, %c0_8] : memref<128x128xbf16, #tpu.memory_space<vmem>>, vector<128x128xbf16>
    %cst_9 = arith.constant dense<0.000000e+00> : vector<128xf32>
    %7 = vector.multi_reduction <add>, %3, %cst_9 [0] : vector<512x128xf32> to vector<128xf32>
    %8 = vector.shape_cast %7 : vector<128xf32> to vector<1x128xf32>
    %cst_10 = arith.constant 5.120000e+02 : f32
    %9 = vector.broadcast %cst_10 : f32 to vector<1x128xf32>
    %10 = arith.divf %8, %9 : vector<1x128xf32>
    %11 = vector.broadcast %10 : vector<1x128xf32> to vector<512x128xf32>
    %12 = arith.subf %3, %11 : vector<512x128xf32>
    %13 = vector.broadcast %10 : vector<1x128xf32> to vector<512x128xf32>
    %14 = arith.subf %3, %13 : vector<512x128xf32>
    %15 = arith.mulf %12, %14 : vector<512x128xf32>
    %cst_11 = arith.constant dense<0.000000e+00> : vector<128xf32>
    %16 = vector.multi_reduction <add>, %15, %cst_11 [0] : vector<512x128xf32> to vector<128xf32>
    %17 = vector.shape_cast %16 : vector<128xf32> to vector<1x128xf32>
    %cst_12 = arith.constant 5.120000e+02 : f32
    %18 = vector.broadcast %cst_12 : f32 to vector<1x128xf32>
    %19 = arith.divf %17, %18 : vector<1x128xf32>
    %cst_13 = arith.constant 9.99999974E-6 : f32
    %20 = vector.broadcast %cst_13 : f32 to vector<1x128xf32>
    %21 = arith.addf %19, %20 : vector<1x128xf32>
    %22 = math.rsqrt %21 : vector<1x128xf32>
    %23 = arith.mulf %4, %22 : vector<1x128xf32>
    %24 = vector.broadcast %10 : vector<1x128xf32> to vector<512x128xf32>
    %25 = arith.subf %3, %24 : vector<512x128xf32>
    %26 = vector.broadcast %23 : vector<1x128xf32> to vector<512x128xf32>
    %27 = arith.mulf %25, %26 : vector<512x128xf32>
    %28 = vector.broadcast %5 : vector<1x128xf32> to vector<512x128xf32>
    %29 = arith.addf %27, %28 : vector<512x128xf32>
    %cst_14 = arith.constant 0.000000e+00 : f32
    %30 = vector.broadcast %cst_14 : f32 to vector<512x128xf32>
    %31 = arith.maximumf %29, %30 : vector<512x128xf32>
    %32 = arith.truncf %31 : vector<512x128xf32> to vector<512x128xbf16>
    %cst_15 = arith.constant dense<0.000000e+00> : vector<512x128xf32>
    %33 = tpu.matmul %32, %6, %cst_15 {dimension_numbers = #tpu.dot_dimension_numbers<[1], [0], [0], [1], [0, 0, 1, 1], [], []>} : vector<512x128xbf16>, vector<128x128xbf16>, vector<512x128xf32> -> vector<512x128xf32>
    %c0_16 = arith.constant 0 : index
    %c0_17 = arith.constant 0 : index
    %34 = vector.load %arg5[%c0_16, %c0_17] : memref<1x128xf32, #tpu.memory_space<vmem>>, vector<1x128xf32>
    %c0_18 = arith.constant 0 : index
    %c0_19 = arith.constant 0 : index
    %35 = vector.load %arg6[%c0_18, %c0_19] : memref<1x128xf32, #tpu.memory_space<vmem>>, vector<1x128xf32>
    %c0_20 = arith.constant 0 : index
    %c0_21 = arith.constant 0 : index
    %36 = vector.load %arg7[%c0_20, %c0_21] : memref<128x128xbf16, #tpu.memory_space<vmem>>, vector<128x128xbf16>
    %cst_22 = arith.constant dense<0.000000e+00> : vector<128xf32>
    %37 = vector.multi_reduction <add>, %33, %cst_22 [0] : vector<512x128xf32> to vector<128xf32>
    %38 = vector.shape_cast %37 : vector<128xf32> to vector<1x128xf32>
    %cst_23 = arith.constant 5.120000e+02 : f32
    %39 = vector.broadcast %cst_23 : f32 to vector<1x128xf32>
    %40 = arith.divf %38, %39 : vector<1x128xf32>
    %41 = vector.broadcast %40 : vector<1x128xf32> to vector<512x128xf32>
    %42 = arith.subf %33, %41 : vector<512x128xf32>
    %43 = vector.broadcast %40 : vector<1x128xf32> to vector<512x128xf32>
    %44 = arith.subf %33, %43 : vector<512x128xf32>
    %45 = arith.mulf %42, %44 : vector<512x128xf32>
    %cst_24 = arith.constant dense<0.000000e+00> : vector<128xf32>
    %46 = vector.multi_reduction <add>, %45, %cst_24 [0] : vector<512x128xf32> to vector<128xf32>
    %47 = vector.shape_cast %46 : vector<128xf32> to vector<1x128xf32>
    %cst_25 = arith.constant 5.120000e+02 : f32
    %48 = vector.broadcast %cst_25 : f32 to vector<1x128xf32>
    %49 = arith.divf %47, %48 : vector<1x128xf32>
    %cst_26 = arith.constant 9.99999974E-6 : f32
    %50 = vector.broadcast %cst_26 : f32 to vector<1x128xf32>
    %51 = arith.addf %49, %50 : vector<1x128xf32>
    %52 = math.rsqrt %51 : vector<1x128xf32>
    %53 = arith.mulf %34, %52 : vector<1x128xf32>
    %54 = vector.broadcast %40 : vector<1x128xf32> to vector<512x128xf32>
    %55 = arith.subf %33, %54 : vector<512x128xf32>
    %56 = vector.broadcast %53 : vector<1x128xf32> to vector<512x128xf32>
    %57 = arith.mulf %55, %56 : vector<512x128xf32>
    %58 = vector.broadcast %35 : vector<1x128xf32> to vector<512x128xf32>
    %59 = arith.addf %57, %58 : vector<512x128xf32>
    %cst_27 = arith.constant 0.000000e+00 : f32
    %60 = vector.broadcast %cst_27 : f32 to vector<512x128xf32>
    %61 = arith.maximumf %59, %60 : vector<512x128xf32>
    %62 = arith.truncf %61 : vector<512x128xf32> to vector<512x128xbf16>
    %cst_28 = arith.constant dense<0.000000e+00> : vector<512x128xf32>
    %63 = tpu.matmul %62, %36, %cst_28 {dimension_numbers = #tpu.dot_dimension_numbers<[1], [0], [0], [1], [0, 0, 1, 1], [], []>} : vector<512x128xbf16>, vector<128x128xbf16>, vector<512x128xf32> -> vector<512x128xf32>
    %c0_29 = arith.constant 0 : index
    %c0_30 = arith.constant 0 : index
    %64 = vector.load %arg8[%c0_29, %c0_30] : memref<1x128xf32, #tpu.memory_space<vmem>>, vector<1x128xf32>
    %65 = vector.broadcast %64 : vector<1x128xf32> to vector<512x128xf32>
    %66 = arith.addf %63, %65 : vector<512x128xf32>
    %c0_31 = arith.constant 0 : index
    %c0_32 = arith.constant 0 : index
    %67 = vector.load %arg9[%c0_31, %c0_32] : memref<512x128xf32, #tpu.memory_space<vmem>>, vector<512x128xf32>
    tpu.vector_store %arg9[%c0_31, %c0_32], %66 {strides = array<i32>} : memref<512x128xf32, #tpu.memory_space<vmem>>, vector<512x128xf32>,
    return
  }
}

</mosaic_0001>

<bundles_post_ra>
// kernel: mlp_forward.1
= control target key start
LH: loop header
LB: loop body
LE: loop exit
PB: predicated region body
PF: predicated region fallthrough
CT: control target
= control target key end

     0   :  { %vm145_vm0 = vcmask 261120   ;;  %s5244_s1 = inlined_call_operand.vmem [shape: bf16[32,128], index: 1, kind: input, shape index: {}]   ;;  %s5245_s0 = inlined_call_operand.vmem [shape: f32[512,32], index: 0, kind: input, shape index: {}]   ;;  %s5246_s4 = inlined_call_operand.vmem [shape: bf16[128,128], index: 4, kind: input, shape index: {}]   ;;  %s5247_s2 = inlined_call_operand.vmem [shape: f32[1,128], index: 2, kind: input, shape index: {}]   ;;  %s5248_s3 = inlined_call_operand.vmem [shape: f32[1,128], index: 3, kind: input, shape index: {}]   ;;  %s5249_s7 = inlined_call_operand.vmem [shape: bf16[128,128], index: 7, kind: input, shape index: {}]   ;;  %s5250_s5 = inlined_call_operand.vmem [shape: f32[1,128], index: 5, kind: input, shape index: {}]   ;;  %s5251_s6 = inlined_call_operand.vmem [shape: f32[1,128], index: 6, kind: input, shape index: {}]   ;;  %s5252_s8 = inlined_call_operand.vmem [shape: f32[1,128], index: 8, kind: input, shape index: {}]   ;;  %s5253_s9 = inlined_call_operand.vmem [shape: f32[512,128], index: 9, kind: output, shape index: {}]  }
   0x1   :  { %v2730_v0 = vld [vmem:[%s5244_s1] sm:$0xff]   ;;  %v2731_v1 = vld [vmem:[%s5244_s1 + $0x8] sm:$0xff]   ;;  %v35_v5 = vld [vmem:[%s5245_s0 + $0x10] sm:$0xff] }
   0x2   :  { %2498 = vmatprep.subr.bf16.mxu0 %v2730_v0  ;;  %v33_v2 = vld [vmem:[%s5245_s0] sm:$0xff]  ;;  %v34_v3 = vld [vmem:[%s5245_s0 + $0x8] sm:$0xff]  ;;  %2726 = vmatprep.subr.bf16.mxu1 %v2730_v0  ;;  %v36_v6 = vld [vmem:[%s5245_s0 + $0x18] sm:$0xff] }
   0x3   :  { %2499 = vmatpush3.bf16.msra.mxu0 %v2730_v0  ;;  %v97_v4 = vpack.c.bf16 %v34_v3, %v33_v2  ;;  %2728 = vmatpush3.bf16.msra.mxu1 %v2730_v0  ;;  %v37_v7 = vld [vmem:[%s5245_s0 + $0x20] sm:$0xff]  ;;  %v38_v8 = vld [vmem:[%s5245_s0 + $0x28] sm:$0xff]  ;;  %v98_v9 = vpack.c.bf16 %v36_v6, %v35_v5  ;;  %v39_v11 = vld [vmem:[%s5245_s0 + $0x30] sm:$0xff] }
   0x4   :  { %2500 = vmatprep.subr.bf16.mxu0 %v2731_v1  ;;  %2727 = vmatprep.subr.bf16.mxu1 %v2731_v1  ;;  %v99_v10 = vpack.c.bf16 %v38_v8, %v37_v7  ;;  %v40_v12 = vld [vmem:[%s5245_s0 + $0x38] sm:$0xff]  ;;  %v41_v13 = vld [vmem:[%s5245_s0 + $0x40] sm:$0xff]  ;;  %v42_v14 = vld [vmem:[%s5245_s0 + $0x48] sm:$0xff] }
   0x5   :  { %2502 = vmatprep.mubr.msk.bf16.mxu0 %vm145_vm0, %v97_v4  ;;  %v65_v15 = vld [vmem:[%s5245_s0 + $0x100] sm:$0xff]  ;;  %v66_v16 = vld [vmem:[%s5245_s0 + $0x108] sm:$0xff]  ;;  %v67_v17 = vld [vmem:[%s5245_s0 + $0x110] sm:$0xff]  ;;  %v100_v19 = vpack.c.bf16 %v40_v12, %v39_v11  ;;  %v101_v24 = vpack.c.bf16 %v42_v14, %v41_v13 }
   0x6   :  { %v68_v18 = vld [vmem:[%s5245_s0 + $0x118] sm:$0xff]  ;;  %v113_v20 = vpack.c.bf16 %v66_v16, %v65_v15  ;;  %v69_v22 = vld [vmem:[%s5245_s0 + $0x120] sm:$0xff]  ;;  %v70_v23 = vld [vmem:[%s5245_s0 + $0x128] sm:$0xff] }
   0x7   :  { %2501 = vmatpush3.bf16.msra.mxu0 %v2731_v1  ;;  %2729 = vmatpush3.bf16.msra.mxu1 %v2731_v1  ;;  %v114_v21 = vpack.c.bf16 %v68_v18, %v67_v17  ;;  %v115_v25 = vpack.c.bf16 %v70_v23, %v69_v22  ;;  %v43_v26 = vld [vmem:[%s5245_s0 + $0x50] sm:$0xff]  ;;  %v72_v28 = vld [vmem:[%s5245_s0 + $0x138] sm:$0xff]  ;;  %v73_v30 = vld [vmem:[%s5245_s0 + $0x140] sm:$0xff] }
   0x8   :  { %2534 = vmatprep.mubr.msk.bf16.mxu1 %vm145_vm0, %v113_v20  ;;  %v71_v27 = vld [vmem:[%s5245_s0 + $0x130] sm:$0xff]  ;;  %v44_v29 = vld [vmem:[%s5245_s0 + $0x58] sm:$0xff]  ;;  %v74_v31 = vld [vmem:[%s5245_s0 + $0x148] sm:$0xff] }
   0x9   :  { %v45_v32 = vld [vmem:[%s5245_s0 + $0x60] sm:$0xff]  ;;  %v46_v33 = vld [vmem:[%s5245_s0 + $0x68] sm:$0xff]  ;;  %v116_v34 = vpack.c.bf16 %v72_v28, %v71_v27  ;;  %v102_v35 = vpack.c.bf16 %v44_v29, %v43_v26  ;;  %v117_v36 = vpack.c.bf16 %v74_v31, %v73_v30  ;;  %v47_v38 = vld [vmem:[%s5245_s0 + $0x70] sm:$0xff] }
   0xa   :  { %2503 = vmatmul.mubr.msk.bf16.vlgmr.msra.gmra.mrb[0].mxu0 %vm145_vm0, %v98_v9  ;;  %2535 = vmatmul.mubr.msk.bf16.vlgmr.msra.gmra.mrb[0].mxu1 %vm145_vm0, %v114_v21  ;;  %v103_v37 = vpack.c.bf16 %v46_v33, %v45_v32  ;;  %v75_v39 = vld [vmem:[%s5245_s0 + $0x150] sm:$0xff]  ;;  %v76_v40 = vld [vmem:[%s5245_s0 + $0x158] sm:$0xff]  ;;  %v77_v42 = vld [vmem:[%s5245_s0 + $0x160] sm:$0xff] }
   0xb   :  { %2506 = vmatprep.mubr.msk.bf16.mxu0 %vm145_vm0, %v99_v10  ;;  %2538 = vmatprep.mubr.msk.bf16.mxu1 %vm145_vm0, %v115_v25  ;;  %v48_v41 = vld [vmem:[%s5245_s0 + $0x78] sm:$0xff]  ;;  %v78_v43 = vld [vmem:[%s5245_s0 + $0x168] sm:$0xff]  ;;  %v49_v44 = vld [vmem:[%s5245_s0 + $0x80] sm:$0xff]  ;;  %v118_v46 = vpack.c.bf16 %v76_v40, %v75_v39 }
   0xc   :  { %v50_v45 = vld [vmem:[%s5245_s0 + $0x88] sm:$0xff]  ;;  %v104_v47 = vpack.c.bf16 %v48_v41, %v47_v38  ;;  %v119_v48 = vpack.c.bf16 %v78_v43, %v77_v42  ;;  %v51_v50 = vld [vmem:[%s5245_s0 + $0x90] sm:$0xff]  ;;  %v80_v52 = vld [vmem:[%s5245_s0 + $0x178] sm:$0xff] }
   0xd   :  { %v105_v49 = vpack.c.bf16 %v50_v45, %v49_v44  ;;  %v79_v51 = vld [vmem:[%s5245_s0 + $0x170] sm:$0xff]  ;;  %v52_v53 = vld [vmem:[%s5245_s0 + $0x98] sm:$0xff]  ;;  %v81_v54 = vld [vmem:[%s5245_s0 + $0x180] sm:$0xff] }
   0xe   :  { %v82_v55 = vld [vmem:[%s5245_s0 + $0x188] sm:$0xff]  ;;  %v53_v56 = vld [vmem:[%s5245_s0 + $0xa0] sm:$0xff]  ;;  %v120_v58 = vpack.c.bf16 %v80_v52, %v79_v51  ;;  %v106_v59 = vpack.c.bf16 %v52_v53, %v51_v50  ;;  %v55_v62 = vld [vmem:[%s5245_s0 + $0xb0] sm:$0xff] }
   0xf   :  { %v54_v57 = vld [vmem:[%s5245_s0 + $0xa8] sm:$0xff]  ;;  %v121_v60 = vpack.c.bf16 %v82_v55, %v81_v54  ;;  %v83_v63 = vld [vmem:[%s5245_s0 + $0x190] sm:$0xff]  ;;  %v84_v0 = vld [vmem:[%s5245_s0 + $0x198] sm:$0xff] }
  0x10   :  { %v107_v61 = vpack.c.bf16 %v54_v57, %v53_v56  ;;  %v56_v1 = vld [vmem:[%s5245_s0 + $0xb8] sm:$0xff]  ;;  %v85_v2 = vld [vmem:[%s5245_s0 + $0x1a0] sm:$0xff]  ;;  %v86_v3 = vld [vmem:[%s5245_s0 + $0x1a8] sm:$0xff]  ;;  %v122_v6 = vpack.c.bf16 %v84_v0, %v83_v63 }
  0x11   :  { %v57_v4 = vld [vmem:[%s5245_s0 + $0xc0] sm:$0xff]  ;;  %v58_v5 = vld [vmem:[%s5245_s0 + $0xc8] sm:$0xff]  ;;  %v108_v7 = vpack.c.bf16 %v56_v1, %v55_v62  ;;  %v123_v8 = vpack.c.bf16 %v86_v3, %v85_v2  ;;  %v59_v10 = vld [vmem:[%s5245_s0 + $0xd0] sm:$0xff] }
  0x12   :  { %2507 = vmatmul.mubr.msk.bf16.gmra.mrb[4].mxu0 %vm145_vm0, %v100_v19  ;;  %2539 = vmatmul.mubr.msk.bf16.gmra.mrb[4].mxu1 %vm145_vm0, %v116_v34  ;;  %v109_v9 = vpack.c.bf16 %v58_v5, %v57_v4  ;;  %v87_v11 = vld [vmem:[%s5245_s0 + $0x1b0] sm:$0xff]  ;;  %v88_v12 = vld [vmem:[%s5245_s0 + $0x1b8] sm:$0xff]  ;;  %v89_v14 = vld [vmem:[%s5245_s0 + $0x1c0] sm:$0xff] }
  0x13   :  { %2510 = vmatprep.mubr.msk.bf16.mxu0 %vm145_vm0, %v101_v24  ;;  %2542 = vmatprep.mubr.msk.bf16.mxu1 %vm145_vm0, %v117_v36  ;;  %v60_v13 = vld [vmem:[%s5245_s0 + $0xd8] sm:$0xff]  ;;  %v90_v15 = vld [vmem:[%s5245_s0 + $0x1c8] sm:$0xff]  ;;  %v61_v16 = vld [vmem:[%s5245_s0 + $0xe0] sm:$0xff]  ;;  %v124_v18 = vpack.c.bf16 %v88_v12, %v87_v11 }
  0x14   :  { %v62_v17 = vld [vmem:[%s5245_s0 + $0xe8] sm:$0xff]  ;;  %v110_v19 = vpack.c.bf16 %v60_v13, %v59_v10  ;;  %v125_v20 = vpack.c.bf16 %v90_v15, %v89_v14  ;;  %v63_v22 = vld [vmem:[%s5245_s0 + $0xf0] sm:$0xff]  ;;  %v92_v24 = vld [vmem:[%s5245_s0 + $0x1d8] sm:$0xff] }
  0x15   :  { %v111_v21 = vpack.c.bf16 %v62_v17, %v61_v16  ;;  %v91_v23 = vld [vmem:[%s5245_s0 + $0x1d0] sm:$0xff]  ;;  %v64_v25 = vld [vmem:[%s5245_s0 + $0xf8] sm:$0xff]  ;;  %v93_v26 = vld [vmem:[%s5245_s0 + $0x1e0] sm:$0xff] }
  0x16   :  { %v94_v27 = vld [vmem:[%s5245_s0 + $0x1e8] sm:$0xff]  ;;  %v126_v28 = vpack.c.bf16 %v92_v24, %v91_v23  ;;  %v112_v29 = vpack.c.bf16 %v64_v25, %v63_v22  ;;  %v95_v31 = vld [vmem:[%s5245_s0 + $0x1f0] sm:$0xff]  ;;  %v96_v32 = vld [vmem:[%s5245_s0 + $0x1f8] sm:$0xff] }
  0x17   :  { %v127_v30 = vpack.c.bf16 %v94_v27, %v93_v26  ;;  %v128_v33 = vpack.c.bf16 %v96_v32, %v95_v31 }
  0x1a   :  { %2511 = vmatmul.mubr.msk.bf16.gmra.mrb[8].mxu0 %vm145_vm0, %v102_v35  ;;  %2543 = vmatmul.mubr.msk.bf16.gmra.mrb[8].mxu1 %vm145_vm0, %v118_v46 }
  0x1b   :  { %2514 = vmatprep.mubr.msk.bf16.mxu0 %vm145_vm0, %v103_v37  ;;  %2546 = vmatprep.mubr.msk.bf16.mxu1 %vm145_vm0, %v119_v48 }
  0x22   :  { %2515 = vmatmul.mubr.msk.bf16.gmra.mrb[12].mxu0 %vm145_vm0, %v104_v47  ;;  %2547 = vmatmul.mubr.msk.bf16.gmra.mrb[12].mxu1 %vm145_vm0, %v120_v58 }
  0x23   :  { %2518 = vmatprep.mubr.msk.bf16.mxu0 %vm145_vm0, %v105_v49  ;;  %2550 = vmatprep.mubr.msk.bf16.mxu1 %vm145_vm0, %v121_v60 }
  0x2a   :  { %2519 = vmatmul.mubr.msk.bf16.gmra.mrb[16].mxu0 %vm145_vm0, %v106_v59  ;;  %2551 = vmatmul.mubr.msk.bf16.gmra.mrb[16].mxu1 %vm145_vm0, %v122_v6 }
  0x2b   :  { %2522 = vmatprep.mubr.msk.bf16.mxu0 %vm145_vm0, %v107_v61  ;;  %2554 = vmatprep.mubr.msk.bf16.mxu1 %vm145_vm0, %v123_v8 }
  0x32   :  { %2523 = vmatmul.mubr.msk.bf16.gmra.mrb[20].mxu0 %vm145_vm0, %v108_v7  ;;  %2555 = vmatmul.mubr.msk.bf16.gmra.mrb[20].mxu1 %vm145_vm0, %v124_v18 }
  0x33   :  { %2526 = vmatprep.mubr.msk.bf16.mxu0 %vm145_vm0, %v109_v9  ;;  %2558 = vmatprep.mubr.msk.bf16.mxu1 %vm145_vm0, %v125_v20 }
  0x3a   :  { %2527 = vmatmul.mubr.msk.bf16.gmra.mrb[24].mxu0 %vm145_vm0, %v110_v19  ;;  %2559 = vmatmul.mubr.msk.bf16.gmra.mrb[24].mxu1 %vm145_vm0, %v126_v28 }
  0x3b   :  { %2530 = vmatprep.mubr.msk.bf16.mxu0 %vm145_vm0, %v111_v21  ;;  %2562 = vmatprep.mubr.msk.bf16.mxu1 %vm145_vm0, %v127_v30 }
  0x42   :  { %2531 = vmatmul.mubr.msk.bf16.gmra.mrb[28].mxu0 %vm145_vm0, %v112_v29  ;;  %2563 = vmatmul.mubr.msk.bf16.gmra.mrb[28].mxu1 %vm145_vm0, %v128_v33 }
  0xdd   :  { %v3032_v34 = vpop.f32.mrb[0].mxu0  ;;  %v3043_v40 = vpop.f32.mrb[0].mxu1 }
  0xde   :  { %v3034_v35 = vpop.f32.mrb[1].mxu0  ;;  %v3048_v43 = vpop.f32.mrb[1].mxu1 }
  0xdf   :  { %v3036_v36 = vpop.f32.mrb[2].mxu0  ;;  %5339 = vst [vmem:[#allocation2_spill] sm:$0xff] %v3048_v43  ;;  %v3052_v45 = vpop.f32.mrb[2].mxu1 }
  0xe0   :  { %v3038_v37 = vpop.f32.mrb[3].mxu0  ;;  %v3057_v48 = vpop.f32.mrb[3].mxu1 }
  0xe1   :  { %v549_v38 = vadd.f32 %v3038_v37, %v3034_v35 }
  0xe3   :  { %v550_v39 = vadd.f32 %v3032_v34, %v549_v38 }
  0xe5   :  { %v3045_v41 = vpop.f32.mrb[4].mxu0  ;;  %v551_v42 = vadd.f32 %v3036_v36, %v550_v39  ;;  %v3063_v52 = vpop.f32.mrb[4].mxu1 }
  0xe6   :  { %v3050_v44 = vpop.f32.mrb[5].mxu0  ;;  %v3068_v55 = vpop.f32.mrb[5].mxu1 }
  0xe7   :  { %v552_v46 = vadd.f32 %v551_v42, %v3050_v44  ;;  %v3055_v47 = vpop.f32.mrb[6].mxu0  ;;  %v3072_v57 = vpop.f32.mrb[6].mxu1 }
  0xe8   :  { %v3059_v49 = vpop.f32.mrb[7].mxu0  ;;  %v3077_v60 = vpop.f32.mrb[7].mxu1 }
  0xe9   :  { %v553_v50 = vadd.f32 %v552_v46, %v3059_v49 }
  0xeb   :  { %v554_v51 = vadd.f32 %v3045_v41, %v553_v50 }
  0xed   :  { %v3065_v53 = vpop.f32.mrb[8].mxu0  ;;  %v555_v54 = vadd.f32 %v3055_v47, %v554_v51  ;;  %v3083_v0 = vpop.f32.mrb[8].mxu1 }
  0xee   :  { %v3070_v56 = vpop.f32.mrb[9].mxu0  ;;  %v3088_v3 = vpop.f32.mrb[9].mxu1 }
  0xef   :  { %v556_v58 = vadd.f32 %v555_v54, %v3070_v56  ;;  %v3075_v59 = vpop.f32.mrb[10].mxu0  ;;  %v3092_v5 = vpop.f32.mrb[10].mxu1 }
  0xf0   :  { %v3079_v61 = vpop.f32.mrb[11].mxu0  ;;  %v3097_v8 = vpop.f32.mrb[11].mxu1 }
  0xf1   :  { %v557_v62 = vadd.f32 %v556_v58, %v3079_v61 }
  0xf3   :  { %v558_v63 = vadd.f32 %v3065_v53, %v557_v62 }
  0xf5   :  { %v3085_v1 = vpop.f32.mrb[12].mxu0  ;;  %v559_v2 = vadd.f32 %v3075_v59, %v558_v63  ;;  %v3103_v12 = vpop.f32.mrb[12].mxu1 }
  0xf6   :  { %v3090_v4 = vpop.f32.mrb[13].mxu0  ;;  %v3108_v15 = vpop.f32.mrb[13].mxu1 }
  0xf7   :  { %v560_v6 = vadd.f32 %v559_v2, %v3090_v4  ;;  %v3095_v7 = vpop.f32.mrb[14].mxu0  ;;  %v3112_v17 = vpop.f32.mrb[14].mxu1 }
  0xf8   :  { %v3099_v9 = vpop.f32.mrb[15].mxu0  ;;  %v3117_v20 = vpop.f32.mrb[15].mxu1 }
  0xf9   :  { %v561_v10 = vadd.f32 %v560_v6, %v3099_v9 }
  0xfb   :  { %v562_v11 = vadd.f32 %v3085_v1, %v561_v10 }
  0xfd   :  { %v3105_v13 = vpop.f32.mrb[16].mxu0  ;;  %v563_v14 = vadd.f32 %v3095_v7, %v562_v11  ;;  %v3123_v24 = vpop.f32.mrb[16].mxu1 }
  0xfe   :  { %v3110_v16 = vpop.f32.mrb[17].mxu0  ;;  %v3128_v27 = vpop.f32.mrb[17].mxu1 }
  0xff   :  { %v564_v18 = vadd.f32 %v563_v14, %v3110_v16  ;;  %v3115_v19 = vpop.f32.mrb[18].mxu0  ;;  %v3132_v29 = vpop.f32.mrb[18].mxu1 }
 0x100   :  { %v3119_v21 = vpop.f32.mrb[19].mxu0  ;;  %v3137_v32 = vpop.f32.mrb[19].mxu1 }
 0x101   :  { %v565_v22 = vadd.f32 %v564_v18, %v3119_v21 }
 0x103   :  { %v566_v23 = vadd.f32 %v3105_v13, %v565_v22 }
 0x105   :  { %v3125_v25 = vpop.f32.mrb[20].mxu0  ;;  %v567_v26 = vadd.f32 %v3115_v19, %v566_v23  ;;  %v3143_v42 = vpop.f32.mrb[20].mxu1 }
 0x106   :  { %5340 = vst [vmem:[#allocation3_spill] sm:$0xff] %v3125_v25  ;;  %v3130_v28 = vpop.f32.mrb[21].mxu0  ;;  %5342 = vst [vmem:[#allocation5_spill] sm:$0xff] %v3143_v42  ;;  %v3148_v51 = vpop.f32.mrb[21].mxu1 }
 0x107   :  { %v568_v30 = vadd.f32 %v567_v26, %v3130_v28  ;;  %v3135_v31 = vpop.f32.mrb[22].mxu0  ;;  %v3152_v58 = vpop.f32.mrb[22].mxu1 }
 0x108   :  { %5341 = vst [vmem:[#allocation4_spill] sm:$0xff] %v3135_v31  ;;  %v3139_v33 = vpop.f32.mrb[23].mxu0  ;;  %5345 = vst [vmem:[#allocation8_spill] sm:$0xff] %v3152_v58  ;;  %v3157_v2 = vpop.f32.mrb[23].mxu1 }
 0x109   :  { %v569_v38 = vadd.f32 %v568_v30, %v3139_v33  ;;  %5347 = vst [vmem:[#allocation10_spill] sm:$0xff] %v3157_v2 }
 0x10b   :  { %v570_v39 = vadd.f32 %v3125_v25, %v569_v38 }
 0x10d   :  { %v3145_v46 = vpop.f32.mrb[24].mxu0  ;;  %v571_v50 = vadd.f32 %v3135_v31, %v570_v39  ;;  %v3163_v14 = vpop.f32.mrb[24].mxu1 }
 0x10e   :  { %5343 = vst [vmem:[#allocation6_spill] sm:$0xff] %v3145_v46  ;;  %v3150_v54 = vpop.f32.mrb[25].mxu0  ;;  %v3168_v23 = vpop.f32.mrb[25].mxu1 }
 0x10f   :  { %5344 = vst [vmem:[#allocation7_spill] sm:$0xff] %v3150_v54  ;;  %v572_v62 = vadd.f32 %v571_v50, %v3150_v54  ;;  %v3155_v63 = vpop.f32.mrb[26].mxu0  ;;  %5350 = vst [vmem:[#allocation13_spill] sm:$0xff] %v3168_v23  ;;  %v3172_v30 = vpop.f32.mrb[26].mxu1 }
 0x110   :  { %5346 = vst [vmem:[#allocation9_spill] sm:$0xff] %v3155_v63  ;;  %v3159_v6 = vpop.f32.mrb[27].mxu0  ;;  %v3177_v50 = vpop.f32.mrb[27].mxu1 }
 0x111   :  { %5348 = vst [vmem:[#allocation11_spill] sm:$0xff] %v3159_v6  ;;  %v573_v10 = vadd.f32 %v572_v62, %v3159_v6 }
 0x113   :  { %v574_v11 = vadd.f32 %v3145_v46, %v573_v10 }
 0x115   :  { %v3165_v18 = vpop.f32.mrb[28].mxu0  ;;  %v575_v22 = vadd.f32 %v3155_v63, %v574_v11  ;;  %v3183_v6 = vpop.f32.mrb[28].mxu1 }
 0x116   :  { %5349 = vst [vmem:[#allocation12_spill] sm:$0xff] %v3165_v18  ;;  %v3170_v26 = vpop.f32.mrb[29].mxu0  ;;  %v3186_v63 = vpop.f32.mrb[29].mxu1 }
 0x117   :  { %5351 = vst [vmem:[#allocation14_spill] sm:$0xff] %v3170_v26  ;;  %v576_v38 = vadd.f32 %v575_v22, %v3170_v26  ;;  %v3175_v39 = vpop.f32.mrb[30].mxu0  ;;  %v3188_v54 = vpop.f32.mrb[30].mxu1 }
 0x118   :  { %5352 = vst [vmem:[#allocation15_spill] sm:$0xff] %v3175_v39  ;;  %v3179_v62 = vpop.f32.mrb[31].mxu0  ;;  %v3191_v26 = vpop.f32.mrb[31].mxu1 }
 0x119   :  { %5353 = vst [vmem:[#allocation16_spill] sm:$0xff] %v3179_v62  ;;  %v577_v10 = vadd.f32 %v576_v38, %v3179_v62 }
 0x11b   :  { %v578_v46 = vadd.f32 %v3165_v18, %v577_v10 }
 0x11d   :  { %v579_v11 = vadd.f32 %v3175_v39, %v578_v46 }
 0x11f   :  { %v580_v22 = vadd.f32 %v579_v11, %v3048_v43 }
 0x121   :  { %v581_v31 = vadd.f32 %v580_v22, %v3057_v48 }
 0x123   :  { %v582_v25 = vadd.f32 %v3043_v40, %v581_v31 }
 0x125   :  { %v583_v38 = vadd.f32 %v3052_v45, %v582_v25 }
 0x127   :  { %v584_v10 = vadd.f32 %v583_v38, %v3068_v55 }
 0x129   :  { %v585_v18 = vadd.f32 %v584_v10, %v3077_v60 }
 0x12b   :  { %v586_v46 = vadd.f32 %v3063_v52, %v585_v18 }
 0x12d   :  { %v587_v39 = vadd.f32 %v3072_v57, %v586_v46 }
 0x12f   :  { %v588_v62 = vadd.f32 %v587_v39, %v3088_v3 }
 0x131   :  { %v589_v11 = vadd.f32 %v588_v62, %v3097_v8 }
 0x133   :  { %v590_v43 = vadd.f32 %v3083_v0, %v589_v11 }
 0x135   :  { %v591_v22 = vadd.f32 %v3092_v5, %v590_v43 }
 0x137   :  { %v592_v31 = vadd.f32 %v591_v22, %v3108_v15 }
 0x139   :  { %v593_v25 = vadd.f32 %v592_v31, %v3117_v20 }
 0x13b   :  { %v594_v38 = vadd.f32 %v3103_v12, %v593_v25 }
 0x13d   :  { %v595_v10 = vadd.f32 %v3112_v17, %v594_v38 }
 0x13f   :  { %v596_v18 = vadd.f32 %v595_v10, %v3128_v27 }
 0x141   :  { %v597_v46 = vadd.f32 %v596_v18, %v3137_v32 }
 0x143   :  { %v598_v39 = vadd.f32 %v3123_v24, %v597_v46 }
 0x145   :  { %v599_v62 = vadd.f32 %v3132_v29, %v598_v39 }
 0x147   :  { %v600_v11 = vadd.f32 %v599_v62, %v3148_v51 }
 0x149   :  { %v601_v43 = vadd.f32 %v600_v11, %v3157_v2 }
 0x14b   :  { %v602_v22 = vadd.f32 %v3143_v42, %v601_v43 }
 0x14d   :  { %v603_v31 = vadd.f32 %v3152_v58, %v602_v22 }
 0x14f   :  { %v604_v25 = vadd.f32 %v603_v31, %v3168_v23 }
 0x151   :  { %v605_v38 = vadd.f32 %v604_v25, %v3177_v50 }
 0x153   :  { %v606_v10 = vadd.f32 %v3163_v14, %v605_v38 }
 0x155   :  { %v607_v18 = vadd.f32 %v3172_v30, %v606_v10 }
 0x157   :  { %v608_v46 = vadd.f32 %v607_v18, %v3186_v63  ;;  %v5362_v18 = vld [vmem:[#allocation4_spill] sm:$0xff] }
 0x159   :  { %v609_v39 = vadd.f32 %v608_v46, %v3191_v26  ;;  %v5364_v46 = vld [vmem:[#allocation7_spill] sm:$0xff] }
 0x15b   :  { %v610_v62 = vadd.f32 %v3183_v6, %v609_v39  ;;  %v5366_v39 = vld [vmem:[#allocation11_spill] sm:$0xff] }
 0x15d   :  { %v611_v11 = vadd.f32 %v3188_v54, %v610_v62  ;;  %v5368_v62 = vld [vmem:[#allocation6_spill] sm:$0xff] }
 0x15f   :  { %v612_v2 = vrot.slane %v611_v11, 4 }
 0x161   :  { %v613_v43 = vadd.f32 %v612_v2, %v611_v11  ;;  %v5370_v11 = vld [vmem:[#allocation9_spill] sm:$0xff] }
 0x163   :  { %v614_v42 = vrot.slane %v613_v43, 2 }
 0x165   :  { %v615_v22 = vadd.f32 %v614_v42, %v613_v43 }
 0x167   :  { %v616_v58 = vrot.slane %v615_v22, 1 }
 0x169   :  { %v617_v31 = vadd.f32 %v616_v58, %v615_v22  ;;  %v5360_v58 = vld [vmem:[#allocation3_spill] sm:$0xff]  ;;  %v5372_v22 = vld [vmem:[#allocation14_spill] sm:$0xff] }
 0x16b   :  { %v3224_v23 = vmul.f32 0.001953125, %v617_v31 }
 0x16d   :  { %v3228_v25 = vsub.f32 %v3034_v35, %v3224_v23  ;;  %v3232_v38 = vsub.f32 %v3038_v37, %v3224_v23  ;;  %v3236_v10 = vsub.f32 %v3032_v34, %v3224_v23  ;;  %v3240_v2 = vsub.f32 %v3036_v36, %v3224_v23 }
 0x16e   :  { %v3244_v42 = vsub.f32 %v3050_v44, %v3224_v23  ;;  %v3248_v35 = vsub.f32 %v3059_v49, %v3224_v23  ;;  %v3252_v37 = vsub.f32 %v3045_v41, %v3224_v23  ;;  %v3256_v34 = vsub.f32 %v3055_v47, %v3224_v23 }
 0x16f   :  { %5354 = vst [vmem:[#allocation17_spill] sm:$0xff] %v3228_v25  ;;  %5355 = vst [vmem:[#allocation18_spill] sm:$0xff] %v3232_v38  ;;  %v3260_v36 = vsub.f32 %v3070_v56, %v3224_v23  ;;  %v3264_v44 = vsub.f32 %v3079_v61, %v3224_v23  ;;  %v3268_v49 = vsub.f32 %v3065_v53, %v3224_v23 }
 0x170   :  { %5356 = vst [vmem:[#allocation19_spill] sm:$0xff] %v3236_v10  ;;  %v3272_v41 = vsub.f32 %v3075_v59, %v3224_v23  ;;  %v3276_v47 = vsub.f32 %v3090_v4, %v3224_v23  ;;  %v3280_v56 = vsub.f32 %v3099_v9, %v3224_v23  ;;  %v3284_v61 = vsub.f32 %v3085_v1, %v3224_v23 }
 0x171   :  { %v3288_v53 = vsub.f32 %v3095_v7, %v3224_v23  ;;  %v3292_v59 = vsub.f32 %v3110_v16, %v3224_v23  ;;  %v3296_v4 = vsub.f32 %v3119_v21, %v3224_v23  ;;  %v3300_v9 = vsub.f32 %v3105_v13, %v3224_v23 }
 0x172   :  { %v3304_v1 = vsub.f32 %v3115_v19, %v3224_v23  ;;  %v3308_v7 = vsub.f32 %v3130_v28, %v3224_v23  ;;  %v3312_v16 = vsub.f32 %v3139_v33, %v3224_v23  ;;  %v3316_v21 = vsub.f32 %v5360_v58, %v3224_v23  ;;  %v5374_v58 = vld [vmem:[#allocation16_spill] sm:$0xff] }
 0x173   :  { %v3320_v13 = vsub.f32 %v5362_v18, %v3224_v23  ;;  %v3324_v19 = vsub.f32 %v5364_v46, %v3224_v23  ;;  %v3328_v28 = vsub.f32 %v5366_v39, %v3224_v23  ;;  %v3332_v33 = vsub.f32 %v5368_v62, %v3224_v23  ;;  %v5376_v46 = vld [vmem:[#allocation12_spill] sm:$0xff] }
 0x174   :  { %5357 = vst [vmem:[#allocation20_spill] sm:$0xff] %v3304_v1  ;;  %5358 = vst [vmem:[#allocation21_spill] sm:$0xff] %v3308_v7  ;;  %v3336_v43 = vsub.f32 %v5370_v11, %v3224_v23  ;;  %v3340_v31 = vsub.f32 %v5372_v22, %v3224_v23  ;;  %v3344_v18 = vsub.f32 %v5374_v58, %v3224_v23 }
 0x175   :  { %5359 = vst [vmem:[#allocation22_spill] sm:$0xff] %v3312_v16  ;;  %5361 = vst [vmem:[#allocation3_spill] sm:$0xff] %v3316_v21  ;;  %v3348_v39 = vsub.f32 %v5376_v46, %v3224_v23  ;;  %v3360_v22 = vsub.f32 %v3057_v48, %v3224_v23  ;;  %v3364_v58 = vsub.f32 %v3043_v40, %v3224_v23 }
 0x176   :  { %5363 = vst [vmem:[#allocation4_spill] sm:$0xff] %v3320_v13  ;;  %5365 = vst [vmem:[#allocation7_spill] sm:$0xff] %v3324_v19  ;;  %v3368_v46 = vsub.f32 %v3052_v45, %v3224_v23  ;;  %v3380_v48 = vsub.f32 %v3063_v52, %v3224_v23  ;;  %v3384_v40 = vsub.f32 %v3072_v57, %v3224_v23 }
 0x177   :  { %5367 = vst [vmem:[#allocation11_spill] sm:$0xff] %v3328_v28  ;;  %5369 = vst [vmem:[#allocation6_spill] sm:$0xff] %v3332_v33  ;;  %v5378_v28 = vld [vmem:[#allocation15_spill] sm:$0xff]  ;;  %v5380_v33 = vld [vmem:[#allocation2_spill] sm:$0xff]  ;;  %v3388_v45 = vsub.f32 %v3088_v3, %v3224_v23  ;;  %v3400_v52 = vsub.f32 %v3092_v5, %v3224_v23  ;;  %v3404_v57 = vsub.f32 %v3108_v15, %v3224_v23 }
 0x178   :  { %5371 = vst [vmem:[#allocation9_spill] sm:$0xff] %v3336_v43  ;;  %5373 = vst [vmem:[#allocation14_spill] sm:$0xff] %v3340_v31  ;;  %v3352_v62 = vsub.f32 %v5378_v28, %v3224_v23  ;;  %v3356_v11 = vsub.f32 %v5380_v33, %v3224_v23  ;;  %v3372_v28 = vsub.f32 %v3068_v55, %v3224_v23 }
 0x179   :  { %5375 = vst [vmem:[#allocation16_spill] sm:$0xff] %v3344_v18  ;;  %5377 = vst [vmem:[#allocation12_spill] sm:$0xff] %v3348_v39  ;;  %v3376_v33 = vsub.f32 %v3077_v60, %v3224_v23  ;;  %v3392_v55 = vsub.f32 %v3097_v8, %v3224_v23  ;;  %v3396_v60 = vsub.f32 %v3083_v0, %v3224_v23 }
 0x17a   :  { %5379 = vst [vmem:[#allocation15_spill] sm:$0xff] %v3352_v62  ;;  %5381 = vst [vmem:[#allocation2_spill] sm:$0xff] %v3356_v11  ;;  %v3408_v3 = vsub.f32 %v3117_v20, %v3224_v23  ;;  %v3412_v8 = vsub.f32 %v3103_v12, %v3224_v23  ;;  %v3416_v0 = vsub.f32 %v3112_v17, %v3224_v23 }
 0x17b   :  { %5382 = vst [vmem:[#allocation23_spill] sm:$0xff] %v3360_v22  ;;  %v3420_v5 = vsub.f32 %v3128_v27, %v3224_v23  ;;  %v3424_v15 = vsub.f32 %v3137_v32, %v3224_v23  ;;  %v3428_v20 = vsub.f32 %v3123_v24, %v3224_v23  ;;  %v3432_v12 = vsub.f32 %v3132_v29, %v3224_v23 }
 0x17c   :  { %5383 = vst [vmem:[#allocation24_spill] sm:$0xff] %v3416_v0  ;;  %v3436_v17 = vsub.f32 %v3148_v51, %v3224_v23  ;;  %v5387_v0 = vld [vmem:[#allocation10_spill] sm:$0xff]  ;;  %v3456_v51 = vsub.f32 %v3177_v50, %v3224_v23  ;;  %v3476_v50 = vsub.f32 %v3183_v6, %v3224_v23  ;;  %v688_v6 = vmul.f32 %v3244_v42, %v3244_v42 }
 0x17d   :  { %5384 = vst [vmem:[#allocation25_spill] sm:$0xff] %v3420_v5  ;;  %5385 = vst [vmem:[#allocation26_spill] sm:$0xff] %v3424_v15  ;;  %v3440_v27 = vsub.f32 %v5387_v0, %v3224_v23  ;;  %v5388_v5 = vld [vmem:[#allocation5_spill] sm:$0xff]  ;;  %v5389_v15 = vld [vmem:[#allocation8_spill] sm:$0xff]  ;;  %v3460_v0 = vsub.f32 %v3163_v14, %v3224_v23  ;;  %v3480_v14 = vsub.f32 %v3188_v54, %v3224_v23 }
 0x17e   :  { %5386 = vst [vmem:[#allocation27_spill] sm:$0xff] %v3428_v20  ;;  %v3444_v32 = vsub.f32 %v5388_v5, %v3224_v23  ;;  %v3448_v24 = vsub.f32 %v5389_v15, %v3224_v23  ;;  %v5390_v20 = vld [vmem:[#allocation13_spill] sm:$0xff]  ;;  %v3464_v5 = vsub.f32 %v3172_v30, %v3224_v23  ;;  %v3468_v15 = vsub.f32 %v3186_v63, %v3224_v23 }
 0x17f   :  { %v3452_v29 = vsub.f32 %v5390_v20, %v3224_v23  ;;  %v3472_v20 = vsub.f32 %v3191_v26, %v3224_v23  ;;  %5394 = vst [vmem:[#allocation13_spill] sm:$0xff] %v3476_v50  ;;  %v684_v30 = vmul.f32 %v3228_v25, %v3228_v25  ;;  %v686_v63 = vmul.f32 %v3236_v10, %v3236_v10 }
 0x180   :  { %5391 = vst [vmem:[#allocation10_spill] sm:$0xff] %v3464_v5  ;;  %5392 = vst [vmem:[#allocation5_spill] sm:$0xff] %v3468_v15  ;;  %v685_v5 = vmul.f32 %v3232_v38, %v3232_v38  ;;  %v687_v26 = vmul.f32 %v3240_v2, %v3240_v2  ;;  %v689_v54 = vmul.f32 %v3248_v35, %v3248_v35 }
 0x181   :  { %5393 = vst [vmem:[#allocation8_spill] sm:$0xff] %v3472_v20  ;;  %v690_v25 = vmul.f32 %v3252_v37, %v3252_v37  ;;  %v691_v10 = vmul.f32 %v3256_v34, %v3256_v34 }
 0x182   :  { %v748_v15 = vadd.f32 %v685_v5, %v684_v30  ;;  %v692_v30 = vmul.f32 %v3260_v36, %v3260_v36 }
 0x184   :  { %v749_v20 = vadd.f32 %v748_v15, %v686_v63  ;;  %v693_v63 = vmul.f32 %v3264_v44, %v3264_v44 }
 0x186   :  { %v750_v50 = vadd.f32 %v749_v20, %v687_v26  ;;  %v694_v26 = vmul.f32 %v3268_v49, %v3268_v49 }
 0x188   :  { %v751_v23 = vadd.f32 %v750_v50, %v688_v6  ;;  %v695_v6 = vmul.f32 %v3272_v41, %v3272_v41 }
 0x18a   :  { %v752_v38 = vadd.f32 %v751_v23, %v689_v54  ;;  %v696_v23 = vmul.f32 %v3276_v47, %v3276_v47 }
 0x18c   :  { %v753_v5 = vadd.f32 %v752_v38, %v690_v25  ;;  %v697_v38 = vmul.f32 %v3280_v56, %v3280_v56 }
 0x18e   :  { %v754_v15 = vadd.f32 %v753_v5, %v691_v10  ;;  %v698_v5 = vmul.f32 %v3284_v61, %v3284_v61 }
 0x190   :  { %v755_v20 = vadd.f32 %v754_v15, %v692_v30  ;;  %v699_v15 = vmul.f32 %v3288_v53, %v3288_v53 }
 0x192   :  { %v756_v50 = vadd.f32 %v755_v20, %v693_v63  ;;  %v700_v20 = vmul.f32 %v3292_v59, %v3292_v59 }
 0x194   :  { %v757_v54 = vadd.f32 %v756_v50, %v694_v26  ;;  %v701_v50 = vmul.f32 %v3296_v4, %v3296_v4 }
 0x196   :  { %v758_v25 = vadd.f32 %v757_v54, %v695_v6  ;;  %v702_v54 = vmul.f32 %v3300_v9, %v3300_v9 }
 0x198   :  { %v759_v10 = vadd.f32 %v758_v25, %v696_v23  ;;  %v2732_v25 = vld [vmem:[%s5246_s4] sm:$0xff]  }
 0x199   :  { %2566 = vmatprep.subr.bf16.mxu1 %v2732_v25 }
 0x19a   :  { %v760_v30 = vadd.f32 %v759_v10, %v697_v38  ;;  %v703_v38 = vmul.f32 %v3304_v1, %v3304_v1  ;;  %2567 = vmatpush3.bf16.msra.mxu1 %v2732_v25  ;;  %v708_v25 = vmul.f32 %v3324_v19, %v3324_v19  ;;  %v822_v1 = vlaneseq }
 0x19c   :  { %v761_v63 = vadd.f32 %v760_v30, %v698_v5  ;;  %v704_v5 = vmul.f32 %v3308_v7, %v3308_v7 }
 0x19e   :  { %v762_v26 = vadd.f32 %v761_v63, %v699_v15  ;;  %v2733_v15 = vld [vmem:[%s5246_s4 + $0x8] sm:$0xff]   ;;  %v705_v63 = vmul.f32 %v3312_v16, %v3312_v16 }
 0x19f   :  { %2568 = vmatprep.subr.bf16.mxu1 %v2733_v15 }
 0x1a0   :  { %v763_v6 = vadd.f32 %v762_v26, %v700_v20  ;;  %v706_v26 = vmul.f32 %v3316_v21, %v3316_v21  ;;  %2569 = vmatpush3.bf16.msra.mxu1 %v2733_v15 }
 0x1a2   :  { %v764_v23 = vadd.f32 %v763_v6, %v701_v50  ;;  %v2734_v6 = vld [vmem:[%s5246_s4 + $0x10] sm:$0xff]  }
 0x1a3   :  { %2570 = vmatprep.subr.bf16.mxu1 %v2734_v6 }
 0x1a4   :  { %v765_v10 = vadd.f32 %v764_v23, %v702_v54  ;;  %v707_v54 = vmul.f32 %v3320_v13, %v3320_v13  ;;  %2571 = vmatpush3.bf16.msra.mxu1 %v2734_v6 }
 0x1a6   :  { %v766_v30 = vadd.f32 %v765_v10, %v703_v38  ;;  %v2735_v10 = vld [vmem:[%s5246_s4 + $0x18] sm:$0xff]  }
 0x1a7   :  { %2572 = vmatprep.subr.bf16.mxu1 %v2735_v10 }
 0x1a8   :  { %v767_v20 = vadd.f32 %v766_v30, %v704_v5  ;;  %v5395_v5 = vld [vmem:[#allocation11_spill] sm:$0xff]  ;;  %2573 = vmatpush3.bf16.msra.mxu1 %v2735_v10 }
 0x1a9   :  { %v709_v30 = vmul.f32 %v5395_v5, %v5395_v5 }
 0x1aa   :  { %v768_v50 = vadd.f32 %v767_v20, %v705_v63  ;;  %v5396_v63 = vld [vmem:[#allocation6_spill] sm:$0xff] }
 0x1ab   :  { %v710_v20 = vmul.f32 %v5396_v63, %v5396_v63 }
 0x1ac   :  { %v769_v23 = vadd.f32 %v768_v50, %v706_v26  ;;  %v2736_v26 = vld [vmem:[%s5246_s4 + $0x20] sm:$0xff]   ;;  %v711_v50 = vmul.f32 %v3336_v43, %v3336_v43 }
 0x1ad   :  { %2574 = vmatprep.subr.bf16.mxu1 %v2736_v26 }
 0x1ae   :  { %v770_v38 = vadd.f32 %v769_v23, %v707_v54  ;;  %v712_v54 = vmul.f32 %v3340_v31, %v3340_v31  ;;  %2575 = vmatpush3.bf16.msra.mxu1 %v2736_v26 }
 0x1b0   :  { %v771_v15 = vadd.f32 %v770_v38, %v708_v25  ;;  %v2737_v25 = vld [vmem:[%s5246_s4 + $0x28] sm:$0xff]   ;;  %v713_v38 = vmul.f32 %v3344_v18, %v3344_v18 }
 0x1b1   :  { %2576 = vmatprep.subr.bf16.mxu1 %v2737_v25 }
 0x1b2   :  { %v772_v13 = vadd.f32 %v771_v15, %v709_v30  ;;  %v714_v30 = vmul.f32 %v3348_v39, %v3348_v39  ;;  %2577 = vmatpush3.bf16.msra.mxu1 %v2737_v25 }
 0x1b4   :  { %v773_v6 = vadd.f32 %v772_v13, %v710_v20  ;;  %v2738_v13 = vld [vmem:[%s5246_s4 + $0x30] sm:$0xff]   ;;  %v715_v20 = vmul.f32 %v3352_v62, %v3352_v62 }
 0x1b5   :  { %2578 = vmatprep.subr.bf16.mxu1 %v2738_v13 }
 0x1b6   :  { %v774_v23 = vadd.f32 %v773_v6, %v711_v50  ;;  %v716_v50 = vmul.f32 %v3356_v11, %v3356_v11  ;;  %2579 = vmatpush3.bf16.msra.mxu1 %v2738_v13  ;;  %v720_v13 = vmul.f32 %v3372_v28, %v3372_v28 }
 0x1b8   :  { %v775_v10 = vadd.f32 %v774_v23, %v712_v54  ;;  %v2739_v54 = vld [vmem:[%s5246_s4 + $0x38] sm:$0xff]   ;;  %v717_v23 = vmul.f32 %v3360_v22, %v3360_v22 }
 0x1b9   :  { %2580 = vmatprep.subr.bf16.mxu1 %v2739_v54 }
 0x1ba   :  { %v776_v15 = vadd.f32 %v775_v10, %v713_v38  ;;  %v718_v38 = vmul.f32 %v3364_v58, %v3364_v58  ;;  %2581 = vmatpush3.bf16.msra.mxu1 %v2739_v54 }
 0x1bc   :  { %v777_v26 = vadd.f32 %v776_v15, %v714_v30  ;;  %v719_v30 = vmul.f32 %v3368_v46, %v3368_v46 }
 0x1be   :  { %v778_v6 = vadd.f32 %v777_v26, %v715_v20  ;;  %v721_v26 = vmul.f32 %v3376_v33, %v3376_v33 }
 0x1c0   :  { %v779_v25 = vadd.f32 %v778_v6, %v716_v50  ;;  %v722_v50 = vmul.f32 %v3380_v48, %v3380_v48 }
 0x1c2   :  { %v780_v10 = vadd.f32 %v779_v25, %v717_v23  ;;  %v723_v23 = vmul.f32 %v3384_v40, %v3384_v40  ;;  %v724_v25 = vmul.f32 %v3388_v45, %v3388_v45 }
 0x1c4   :  { %v781_v15 = vadd.f32 %v780_v10, %v718_v38  ;;  %v725_v10 = vmul.f32 %v3392_v55, %v3392_v55 }
 0x1c6   :  { %v782_v20 = vadd.f32 %v781_v15, %v719_v30  ;;  %v726_v15 = vmul.f32 %v3396_v60, %v3396_v60 }
 0x1c8   :  { %v783_v11 = vadd.f32 %v782_v20, %v720_v13  ;;  %v727_v20 = vmul.f32 %v3400_v52, %v3400_v52 }
 0x1ca   :  { %v784_v6 = vadd.f32 %v783_v11, %v721_v26  ;;  %v728_v26 = vmul.f32 %v3404_v57, %v3404_v57 }
 0x1cc   :  { %v785_v54 = vadd.f32 %v784_v6, %v722_v50  ;;  %v729_v6 = vmul.f32 %v3408_v3, %v3408_v3 }
 0x1ce   :  { %v786_v38 = vadd.f32 %v785_v54, %v723_v23  ;;  %v730_v54 = vmul.f32 %v3412_v8, %v3412_v8 }
 0x1d0   :  { %v787_v30 = vadd.f32 %v786_v38, %v724_v25  ;;  %v5397_v38 = vld [vmem:[#allocation24_spill] sm:$0xff] }
 0x1d1   :  { %v731_v22 = vmul.f32 %v5397_v38, %v5397_v38 }
 0x1d2   :  { %v788_v13 = vadd.f32 %v787_v30, %v725_v10  ;;  %v5398_v30 = vld [vmem:[#allocation25_spill] sm:$0xff] }
 0x1d3   :  { %v732_v62 = vmul.f32 %v5398_v30, %v5398_v30 }
 0x1d4   :  { %v789_v11 = vadd.f32 %v788_v13, %v726_v15  ;;  %v5399_v13 = vld [vmem:[#allocation26_spill] sm:$0xff] }
 0x1d5   :  { %v733_v39 = vmul.f32 %v5399_v13, %v5399_v13 }
 0x1d6   :  { %v790_v50 = vadd.f32 %v789_v11, %v727_v20  ;;  %v5400_v11 = vld [vmem:[#allocation27_spill] sm:$0xff] }
 0x1d7   :  { %v734_v18 = vmul.f32 %v5400_v11, %v5400_v11 }
 0x1d8   :  { %v791_v23 = vadd.f32 %v790_v50, %v728_v26  ;;  %v735_v50 = vmul.f32 %v3432_v12, %v3432_v12 }
 0x1da   :  { %v792_v25 = vadd.f32 %v791_v23, %v729_v6  ;;  %v736_v23 = vmul.f32 %v3436_v17, %v3436_v17 }
 0x1dc   :  { %v793_v10 = vadd.f32 %v792_v25, %v730_v54  ;;  %v737_v25 = vmul.f32 %v3440_v27, %v3440_v27 }
 0x1de   :  { %v794_v15 = vadd.f32 %v793_v10, %v731_v22  ;;  %v738_v10 = vmul.f32 %v3444_v32, %v3444_v32 }
 0x1e0   :  { %v795_v20 = vadd.f32 %v794_v15, %v732_v62  ;;  %v739_v15 = vmul.f32 %v3448_v24, %v3448_v24 }
 0x1e2   :  { %v796_v26 = vadd.f32 %v795_v20, %v733_v39  ;;  %v740_v20 = vmul.f32 %v3452_v29, %v3452_v29 }
 0x1e4   :  { %v797_v6 = vadd.f32 %v796_v26, %v734_v18  ;;  %v741_v26 = vmul.f32 %v3456_v51, %v3456_v51 }
 0x1e6   :  { %v798_v54 = vadd.f32 %v797_v6, %v735_v50  ;;  %v742_v6 = vmul.f32 %v3460_v0, %v3460_v0 }
 0x1e8   :  { %v799_v22 = vadd.f32 %v798_v54, %v736_v23  ;;  %v5401_v54 = vld [vmem:[#allocation10_spill] sm:$0xff] }
 0x1e9   :  { %v743_v31 = vmul.f32 %v5401_v54, %v5401_v54 }
 0x1ea   :  { %v800_v62 = vadd.f32 %v799_v22, %v737_v25  ;;  %v5402_v22 = vld [vmem:[#allocation5_spill] sm:$0xff] }
 0x1eb   :  { %v744_v43 = vmul.f32 %v5402_v22, %v5402_v22 }
 0x1ec   :  { %v801_v39 = vadd.f32 %v800_v62, %v738_v10  ;;  %v5403_v62 = vld [vmem:[#allocation8_spill] sm:$0xff] }
 0x1ed   :  { %v745_v63 = vmul.f32 %v5403_v62, %v5403_v62 }
 0x1ee   :  { %v802_v18 = vadd.f32 %v801_v39, %v739_v15  ;;  %v5404_v39 = vld [vmem:[#allocation13_spill] sm:$0xff] }
 0x1ef   :  { %v746_v5 = vmul.f32 %v5404_v39, %v5404_v39 }
 0x1f0   :  { %v803_v50 = vadd.f32 %v802_v18, %v740_v20  ;;  %v747_v18 = vmul.f32 %v3480_v14, %v3480_v14 }
 0x1f2   :  { %v804_v23 = vadd.f32 %v803_v50, %v741_v26 }
 0x1f4   :  { %v805_v25 = vadd.f32 %v804_v23, %v742_v6 }
 0x1f6   :  { %v806_v10 = vadd.f32 %v805_v25, %v743_v31 }
 0x1f8   :  { %v807_v15 = vadd.f32 %v806_v10, %v744_v43  ;;  %v3634_v43 = vshrl.u32 %v822_v1, 7 }
 0x1fa   :  { %v808_v20 = vadd.f32 %v807_v15, %v745_v63  ;;  %5405 = vst [vmem:[#allocation24_spill] sm:$0xff] %v3634_v43  ;;  %v531_v63 = vld [vmem:[%s5247_s2] sm:$0x1]  ;;  %v5295_v10 = vsub.s32 0, %v3634_v43 }
 0x1fc   :  { %v809_v26 = vadd.f32 %v808_v20, %v746_v5 }
 0x1fe   :  { %v810_v50 = vadd.f32 %v809_v26, %v747_v18  ;;  %v5407_v18 = vld [vmem:[#allocation18_spill] sm:$0xff] }
 0x200   :  { %v811_v19 = vrot.slane %v810_v50, 4 }
 0x202   :  { %v812_v21 = vadd.f32 %v811_v19, %v810_v50  ;;  %v5408_v50 = vld [vmem:[#allocation19_spill] sm:$0xff] }
 0x204   :  { %v813_v6 = vrot.slane %v812_v21, 2 }
 0x206   :  { %v814_v23 = vadd.f32 %v813_v6, %v812_v21  ;;  %v5406_v21 = vld [vmem:[#allocation17_spill] sm:$0xff] }
 0x208   :  { %v815_v16 = vrot.slane %v814_v23, 1 }
 0x20a   :  { %v816_v7 = vadd.f32 %v815_v16, %v814_v23 }
 0x20c   :  { %v817_v31 = vmul.f32 0.001953125, %v816_v7  ;;  %v3647_v7 = vld [vmem:[%s5248_s3] ss:$0 sm:$0xff] }
 0x20e   :  { %v818_v25 = vadd.f32 1e-05, %v817_v31 }
 0x210   :  { %2748 = vrsqrt.f32 %v818_v25 }
 0x21a   :  { %v2749_v5 = vpop.eup %2748 }
 0x21b   :  { %v820_v15 = vmul.f32 %v2749_v5, %v531_v63 }
 0x21d   :  { %v3642_v19 = vrot.slane %v820_v15, %v5295_v10 }
 0x21f   :  { %v888_v1 = vmul.f32 %v3642_v19, %v5403_v62  ;;  %v827_v20 = vmul.f32 %v3642_v19, %v5406_v21  ;;  %v828_v26 = vmul.f32 %v3642_v19, %v5407_v18  ;;  %v829_v6 = vmul.f32 %v3642_v19, %v5408_v50 }
 0x220   :  { %v830_v23 = vmul.f32 %v3642_v19, %v3240_v2  ;;  %v831_v31 = vmul.f32 %v3642_v19, %v3244_v42  ;;  %v832_v62 = vmul.f32 %v3642_v19, %v3248_v35  ;;  %v3668_v25 = vmul.f32 %v3642_v19, %v3252_v37 }
 0x221   :  { %v3652_v16 = vadd.f32 %v3647_v7, %v888_v1  ;;  %v3672_v63 = vmul.f32 %v3642_v19, %v3256_v34  ;;  %v3676_v5 = vmul.f32 %v3642_v19, %v3260_v36  ;;  %v3680_v2 = vmul.f32 %v3642_v19, %v3264_v44 }
 0x222   :  { %v3684_v42 = vmul.f32 %v3642_v19, %v3268_v49  ;;  %v3688_v35 = vmul.f32 %v3642_v19, %v3272_v41  ;;  %v861_v37 = vmul.f32 %v3642_v19, %v3364_v58  ;;  %v862_v34 = vmul.f32 %v3642_v19, %v3368_v46 }
 0x223   :  { %v863_v36 = vmul.f32 %v3642_v19, %v3372_v28  ;;  %v864_v44 = vmul.f32 %v3642_v19, %v3376_v33  ;;  %v865_v49 = vmul.f32 %v3642_v19, %v3380_v48  ;;  %v866_v15 = vmul.f32 %v3642_v19, %v3384_v40 }
 0x224   :  { %v867_v41 = vmul.f32 %v3642_v19, %v3388_v45  ;;  %v868_v58 = vmul.f32 %v3642_v19, %v3392_v55  ;;  %v869_v46 = vmul.f32 %v3642_v19, %v3396_v60  ;;  %v870_v28 = vmul.f32 %v3642_v19, %v3400_v52 }
 0x225   :  { %v871_v33 = vmul.f32 %v3642_v19, %v3404_v57  ;;  %v872_v48 = vmul.f32 %v3642_v19, %v3408_v3  ;;  %v873_v40 = vmul.f32 %v3642_v19, %v3412_v8  ;;  %v874_v45 = vmul.f32 %v3642_v19, %v5397_v38 }
 0x226   :  { %v875_v55 = vmul.f32 %v3642_v19, %v5398_v30  ;;  %v876_v60 = vmul.f32 %v3642_v19, %v5399_v13  ;;  %v877_v52 = vmul.f32 %v3642_v19, %v5400_v11  ;;  %v878_v57 = vmul.f32 %v3642_v19, %v3432_v12 }
 0x227   :  { %v879_v3 = vmul.f32 %v3642_v19, %v3436_v17  ;;  %v880_v8 = vmul.f32 %v3642_v19, %v3440_v27  ;;  %v881_v38 = vmul.f32 %v3642_v19, %v3444_v32  ;;  %v882_v30 = vmul.f32 %v3642_v19, %v3448_v24 }
 0x228   :  { %v883_v13 = vmul.f32 %v3642_v19, %v3452_v29  ;;  %v884_v11 = vmul.f32 %v3642_v19, %v3456_v51  ;;  %v885_v12 = vmul.f32 %v3642_v19, %v3460_v0  ;;  %v886_v17 = vmul.f32 %v3642_v19, %v5401_v54 }
 0x229   :  { %v887_v27 = vmul.f32 %v3642_v19, %v5402_v22  ;;  %v889_v32 = vmul.f32 %v3642_v19, %v5404_v39  ;;  %v890_v24 = vmul.f32 %v3642_v19, %v3480_v14  ;;  %v897_v29 = vadd.f32 %v3647_v7, %v827_v20 }
 0x22a   :  { %v898_v1 = vadd.f32 %v3647_v7, %v828_v26  ;;  %v899_v51 = vadd.f32 %v3647_v7, %v829_v6  ;;  %v900_v0 = vadd.f32 %v3647_v7, %v830_v23  ;;  %v901_v21 = vadd.f32 %v3647_v7, %v831_v31 }
 0x22b   :  { %v902_v54 = vadd.f32 %v3647_v7, %v832_v62  ;;  %v3755_v22 = vadd.f32 %v3647_v7, %v861_v37  ;;  %v3758_v39 = vadd.f32 %v3647_v7, %v862_v34  ;;  %v3761_v14 = vadd.f32 %v3647_v7, %v863_v36 }
 0x22c   :  { %v3764_v20 = vadd.f32 %v3647_v7, %v864_v44  ;;  %v3767_v18 = vadd.f32 %v3647_v7, %v865_v49  ;;  %v3770_v26 = vadd.f32 %v3647_v7, %v866_v15  ;;  %v3773_v50 = vadd.f32 %v3647_v7, %v867_v41 }
 0x22d   :  { %v3776_v6 = vadd.f32 %v3647_v7, %v868_v58  ;;  %v3779_v23 = vadd.f32 %v3647_v7, %v869_v46  ;;  %v3782_v31 = vadd.f32 %v3647_v7, %v870_v28  ;;  %v3785_v62 = vadd.f32 %v3647_v7, %v871_v33 }
 0x22e   :  { %v3788_v37 = vadd.f32 %v3647_v7, %v872_v48  ;;  %v3791_v34 = vadd.f32 %v3647_v7, %v873_v40  ;;  %v3794_v36 = vadd.f32 %v3647_v7, %v874_v45  ;;  %v3797_v44 = vadd.f32 %v3647_v7, %v875_v55 }
 0x22f   :  { %v3800_v49 = vadd.f32 %v3647_v7, %v876_v60  ;;  %v3803_v15 = vadd.f32 %v3647_v7, %v877_v52  ;;  %v3806_v41 = vadd.f32 %v3647_v7, %v878_v57  ;;  %v3809_v58 = vadd.f32 %v3647_v7, %v879_v3 }
 0x230   :  { %v3812_v46 = vadd.f32 %v3647_v7, %v880_v8  ;;  %v3815_v28 = vadd.f32 %v3647_v7, %v881_v38  ;;  %v3818_v33 = vadd.f32 %v3647_v7, %v882_v30  ;;  %v3821_v48 = vadd.f32 %v3647_v7, %v883_v13 }
 0x231   :  { %v3824_v40 = vadd.f32 %v3647_v7, %v884_v11  ;;  %v3827_v45 = vadd.f32 %v3647_v7, %v885_v12  ;;  %v3830_v55 = vadd.f32 %v3647_v7, %v886_v17  ;;  %v3833_v60 = vadd.f32 %v3647_v7, %v887_v27 }
 0x232   :  { %v3836_v52 = vadd.f32 %v3647_v7, %v889_v32  ;;  %v3839_v57 = vadd.f32 %v3647_v7, %v890_v24  ;;  %v963_v3 = vmax.f32 %v899_v51, 0.0  ;;  %v964_v8 = vmax.f32 %v900_v0, 0.0 }
 0x233   :  { %v961_v38 = vmax.f32 %v897_v29, 0.0  ;;  %v962_v30 = vmax.f32 %v898_v1, 0.0  ;;  %v839_v13 = vmul.f32 %v3642_v19, %v3276_v47  ;;  %v840_v11 = vmul.f32 %v3642_v19, %v3280_v56 }
 0x234   :  { %v965_v12 = vmax.f32 %v901_v21, 0.0  ;;  %v966_v17 = vmax.f32 %v902_v54, 0.0  ;;  %v1026_v27 = vpack.c.bf16 %v964_v8, %v963_v3  ;;  %v903_v32 = vadd.f32 %v3647_v7, %v3668_v25 }
 0x235   :  { %v1025_v10 = vpack.c.bf16 %v962_v30, %v961_v38  ;;  %v904_v24 = vadd.f32 %v3647_v7, %v3672_v63  ;;  %v905_v29 = vadd.f32 %v3647_v7, %v3676_v5  ;;  %v906_v1 = vadd.f32 %v3647_v7, %v3680_v2 }
 0x236   :  { %v1027_v47 = vpack.c.bf16 %v966_v17, %v965_v12  ;;  %v907_v56 = vadd.f32 %v3647_v7, %v3684_v42  ;;  %v908_v51 = vadd.f32 %v3647_v7, %v3688_v35  ;;  %v909_v0 = vadd.f32 %v3647_v7, %v839_v13 }
 0x237   :  { %2582 = vmatprep.mubr.bf16.mxu1 %v1025_v10  ;;  %v910_v25 = vadd.f32 %v3647_v7, %v840_v11  ;;  %v841_v63 = vmul.f32 %v3642_v19, %v3284_v61  ;;  %v842_v5 = vmul.f32 %v3642_v19, %v3288_v53  ;;  %v843_v10 = vmul.f32 %v3642_v19, %v3292_v59  ;;  %v5409_v53 = vld [vmem:[#allocation20_spill] sm:$0xff]  ;;  %v5410_v59 = vld [vmem:[#allocation21_spill] sm:$0xff] }
 0x238   :  { %2583 = vmatmul.mubr.bf16.vlgmr.msra.gmra.mrb[32].mxu1 %v1026_v27  ;;  %v844_v2 = vmul.f32 %v3642_v19, %v3296_v4  ;;  %v967_v42 = vmax.f32 %v903_v32, 0.0  ;;  %v968_v35 = vmax.f32 %v904_v24, 0.0  ;;  %v969_v21 = vmax.f32 %v905_v29, 0.0 }
 0x239   :  { %2586 = vmatprep.mubr.bf16.mxu1 %v1027_v47  ;;  %v970_v54 = vmax.f32 %v906_v1, 0.0  ;;  %v971_v3 = vmax.f32 %v907_v56, 0.0  ;;  %v972_v8 = vmax.f32 %v908_v51, 0.0  ;;  %v973_v38 = vmax.f32 %v909_v0, 0.0 }
 0x23a   :  { %v974_v30 = vmax.f32 %v910_v25, 0.0  ;;  %v3869_v61 = vmul.f32 %v3642_v19, %v3300_v9  ;;  %v3873_v13 = vmul.f32 %v3642_v19, %v5409_v53  ;;  %v3877_v11 = vmul.f32 %v3642_v19, %v5410_v59 }
 0x23b   :  { %v3880_v4 = vadd.f32 %v3647_v7, %v841_v63  ;;  %v3883_v12 = vadd.f32 %v3647_v7, %v842_v5  ;;  %v3886_v17 = vadd.f32 %v3647_v7, %v843_v10  ;;  %v3889_v9 = vadd.f32 %v3647_v7, %v844_v2 }
 0x23c   :  { %v1028_v27 = vpack.c.bf16 %v968_v35, %v967_v42  ;;  %v1029_v32 = vpack.c.bf16 %v970_v54, %v969_v21  ;;  %v995_v24 = vmax.f32 %v3755_v22, 0.0  ;;  %v996_v29 = vmax.f32 %v3758_v39, 0.0 }
 0x23d   :  { %v997_v1 = vmax.f32 %v3761_v14, 0.0  ;;  %v1030_v47 = vpack.c.bf16 %v972_v8, %v971_v3  ;;  %v1031_v56 = vpack.c.bf16 %v974_v30, %v973_v38  ;;  %v998_v51 = vmax.f32 %v3764_v20, 0.0 }
 0x23e   :  { %v999_v0 = vmax.f32 %v3767_v18, 0.0  ;;  %v3896_v25 = vpack.c.bf16 %v996_v29, %v995_v24  ;;  %v1000_v63 = vmax.f32 %v3770_v26, 0.0  ;;  %v1001_v5 = vmax.f32 %v3773_v50, 0.0 }
 0x23f   :  { %v1002_v22 = vmax.f32 %v3776_v6, 0.0  ;;  %v3901_v10 = vpack.c.bf16 %v998_v51, %v997_v1  ;;  %v1003_v39 = vmax.f32 %v3779_v23, 0.0  ;;  %v1004_v14 = vmax.f32 %v3782_v31, 0.0 }
 0x240   :  { %2587 = vmatmul.mubr.bf16.gmra.mrb[36].mxu1 %v1028_v27  ;;  %v1005_v2 = vmax.f32 %v3785_v62, 0.0  ;;  %v3906_v20 = vpack.c.bf16 %v1000_v63, %v999_v0  ;;  %v1006_v42 = vmax.f32 %v3788_v37, 0.0  ;;  %v1007_v26 = vmax.f32 %v3791_v34, 0.0  ;;  %v5414_v0 = vld [vmem:[#allocation7_spill] sm:$0xff] }
 0x241   :  { %2590 = vmatprep.mubr.bf16.mxu1 %v1029_v32  ;;  %v3908_v18 = vpack.c.bf16 %v1002_v22, %v1001_v5  ;;  %v3912_v35 = vpack.c.bf16 %v1004_v14, %v1003_v39  ;;  %v1008_v50 = vmax.f32 %v3794_v36, 0.0  ;;  %v1009_v6 = vmax.f32 %v3797_v44, 0.0  ;;  %v5415_v63 = vld [vmem:[#allocation11_spill] sm:$0xff] }
 0x242   :  { %v1010_v23 = vmax.f32 %v3800_v49, 0.0  ;;  %v3917_v21 = vpack.c.bf16 %v1006_v42, %v1005_v2  ;;  %v1011_v31 = vmax.f32 %v3803_v15, 0.0  ;;  %v1012_v62 = vmax.f32 %v3806_v41, 0.0 }
 0x243   :  { %v1013_v54 = vmax.f32 %v3809_v58, 0.0  ;;  %v3922_v3 = vpack.c.bf16 %v1008_v50, %v1007_v26  ;;  %v1014_v34 = vmax.f32 %v3812_v46, 0.0  ;;  %v1015_v36 = vmax.f32 %v3815_v28, 0.0 }
 0x244   :  { %v3924_v37 = vpack.c.bf16 %v1010_v23, %v1009_v6  ;;  %v3928_v8 = vpack.c.bf16 %v1012_v62, %v1011_v31  ;;  %v1016_v44 = vmax.f32 %v3818_v33, 0.0  ;;  %v1017_v49 = vmax.f32 %v3821_v48, 0.0  ;;  %v5416_v6 = vld [vmem:[#allocation6_spill] sm:$0xff]  ;;  %v5417_v31 = vld [vmem:[#allocation9_spill] sm:$0xff] }
 0x245   :  { %v1018_v15 = vmax.f32 %v3824_v40, 0.0  ;;  %v3933_v41 = vpack.c.bf16 %v1014_v34, %v1013_v54  ;;  %v1019_v58 = vmax.f32 %v3827_v45, 0.0  ;;  %v1020_v38 = vmax.f32 %v3830_v55, 0.0  ;;  %v5411_v55 = vld [vmem:[#allocation22_spill] sm:$0xff] }
 0x246   :  { %v1021_v30 = vmax.f32 %v3833_v60, 0.0  ;;  %v3938_v46 = vpack.c.bf16 %v1016_v44, %v1015_v36  ;;  %v1022_v33 = vmax.f32 %v3652_v16, 0.0  ;;  %v1023_v48 = vmax.f32 %v3836_v52, 0.0  ;;  %v5418_v36 = vld [vmem:[#allocation14_spill] sm:$0xff] }
 0x247   :  { %v3940_v28 = vpack.c.bf16 %v1018_v15, %v1017_v49  ;;  %v975_v40 = vmax.f32 %v3880_v4, 0.0  ;;  %v976_v53 = vmax.f32 %v3883_v12, 0.0  ;;  %v3946_v59 = vpack.c.bf16 %v1020_v38, %v1019_v58  ;;  %v5419_v49 = vld [vmem:[#allocation16_spill] sm:$0xff] }
 0x248   :  { %2591 = vmatmul.mubr.bf16.gmra.mrb[40].mxu1 %v1030_v47  ;;  %v1024_v45 = vmax.f32 %v3839_v57, 0.0  ;;  %v848_v60 = vmul.f32 %v3642_v19, %v5411_v55  ;;  %v977_v27 = vmax.f32 %v3886_v17, 0.0  ;;  %v978_v32 = vmax.f32 %v3889_v9, 0.0  ;;  %v5412_v17 = vld [vmem:[#allocation3_spill] sm:$0xff]  ;;  %v5413_v47 = vld [vmem:[#allocation4_spill] sm:$0xff] }
 0x249   :  { %2594 = vmatprep.mubr.bf16.mxu1 %v1031_v56  ;;  %v3953_v24 = vpack.c.bf16 %v1022_v33, %v1021_v30  ;;  %v915_v52 = vadd.f32 %v3647_v7, %v3869_v61  ;;  %v916_v4 = vadd.f32 %v3647_v7, %v3873_v13  ;;  %v1032_v12 = vpack.c.bf16 %v976_v53, %v975_v40  ;;  %v5420_v55 = vld [vmem:[#allocation12_spill] sm:$0xff] }
 0x24a   :  { %v3955_v16 = vpack.c.bf16 %v1024_v45, %v1023_v48  ;;  %v917_v57 = vadd.f32 %v3647_v7, %v3877_v11  ;;  %v918_v29 = vadd.f32 %v3647_v7, %v848_v60  ;;  %v1033_v1 = vpack.c.bf16 %v978_v32, %v977_v27  ;;  %v5421_v27 = vld [vmem:[#allocation15_spill] sm:$0xff] }
 0x24b   :  { %v849_v9 = vmul.f32 %v3642_v19, %v5412_v17  ;;  %v850_v56 = vmul.f32 %v3642_v19, %v5413_v47  ;;  %v979_v51 = vmax.f32 %v915_v52, 0.0  ;;  %v980_v61 = vmax.f32 %v916_v4, 0.0 }
 0x24c   :  { %v851_v13 = vmul.f32 %v3642_v19, %v5414_v0  ;;  %v852_v5 = vmul.f32 %v3642_v19, %v5415_v63  ;;  %v981_v11 = vmax.f32 %v917_v57, 0.0  ;;  %v982_v22 = vmax.f32 %v918_v29, 0.0  ;;  %v5423_v29 = vld [vmem:[#allocation23_spill] sm:$0xff] }
 0x24d   :  { %v919_v39 = vadd.f32 %v3647_v7, %v849_v9  ;;  %v920_v14 = vadd.f32 %v3647_v7, %v850_v56  ;;  %v1034_v2 = vpack.c.bf16 %v980_v61, %v979_v51  ;;  %v853_v23 = vmul.f32 %v3642_v19, %v5416_v6 }
 0x24e   :  { %v921_v42 = vadd.f32 %v3647_v7, %v851_v13  ;;  %v922_v26 = vadd.f32 %v3647_v7, %v852_v5  ;;  %v1035_v50 = vpack.c.bf16 %v982_v22, %v981_v11  ;;  %v854_v62 = vmul.f32 %v3642_v19, %v5417_v31 }
 0x24f   :  { %v983_v54 = vmax.f32 %v919_v39, 0.0  ;;  %v984_v34 = vmax.f32 %v920_v14, 0.0  ;;  %v855_v44 = vmul.f32 %v3642_v19, %v5418_v36  ;;  %v856_v15 = vmul.f32 %v3642_v19, %v5419_v49 }
 0x250   :  { %2595 = vmatmul.mubr.bf16.gmra.mrb[44].mxu1 %v1032_v12  ;;  %v985_v58 = vmax.f32 %v921_v42, 0.0  ;;  %v986_v38 = vmax.f32 %v922_v26, 0.0  ;;  %v923_v30 = vadd.f32 %v3647_v7, %v853_v23  ;;  %v924_v33 = vadd.f32 %v3647_v7, %v854_v62  ;;  %v5422_v12 = vld [vmem:[#allocation2_spill] sm:$0xff] }
 0x251   :  { %2598 = vmatprep.mubr.bf16.mxu1 %v1033_v1  ;;  %v1036_v48 = vpack.c.bf16 %v984_v34, %v983_v54  ;;  %v925_v40 = vadd.f32 %v3647_v7, %v855_v44  ;;  %v926_v53 = vadd.f32 %v3647_v7, %v856_v15  ;;  %v857_v60 = vmul.f32 %v3642_v19, %v5420_v55 }
 0x252   :  { %v1037_v45 = vpack.c.bf16 %v986_v38, %v985_v58  ;;  %v858_v32 = vmul.f32 %v3642_v19, %v5421_v27  ;;  %v987_v52 = vmax.f32 %v923_v30, 0.0  ;;  %v988_v4 = vmax.f32 %v924_v33, 0.0 }
 0x253   :  { %v859_v57 = vmul.f32 %v3642_v19, %v5422_v12  ;;  %v860_v1 = vmul.f32 %v3642_v19, %v5423_v29  ;;  %v989_v17 = vmax.f32 %v925_v40, 0.0  ;;  %v990_v9 = vmax.f32 %v926_v53, 0.0 }
 0x254   :  { %v927_v47 = vadd.f32 %v3647_v7, %v857_v60  ;;  %v928_v56 = vadd.f32 %v3647_v7, %v858_v32  ;;  %v1038_v51 = vpack.c.bf16 %v988_v4, %v987_v52 }
 0x255   :  { %v929_v61 = vadd.f32 %v3647_v7, %v859_v57  ;;  %v930_v0 = vadd.f32 %v3647_v7, %v860_v1  ;;  %v1039_v13 = vpack.c.bf16 %v990_v9, %v989_v17 }
 0x256   :  { %v991_v63 = vmax.f32 %v927_v47, 0.0  ;;  %v992_v5 = vmax.f32 %v928_v56, 0.0 }
 0x257   :  { %v993_v11 = vmax.f32 %v929_v61, 0.0  ;;  %v994_v22 = vmax.f32 %v930_v0, 0.0 }
 0x258   :  { %2599 = vmatmul.mubr.bf16.gmra.mrb[48].mxu1 %v1034_v2  ;;  %v1040_v39 = vpack.c.bf16 %v992_v5, %v991_v63 }
 0x259   :  { %2602 = vmatprep.mubr.bf16.mxu1 %v1035_v50  ;;  %v1041_v19 = vpack.c.bf16 %v994_v22, %v993_v11 }
 0x260   :  { %2603 = vmatmul.mubr.bf16.gmra.mrb[52].mxu1 %v1036_v48 }
 0x261   :  { %2606 = vmatprep.mubr.bf16.mxu1 %v1037_v45 }
 0x268   :  { %2607 = vmatmul.mubr.bf16.gmra.mrb[56].mxu1 %v1038_v51 }
 0x269   :  { %2610 = vmatprep.mubr.bf16.mxu1 %v1039_v13 }
 0x270   :  { %2611 = vmatmul.mubr.bf16.gmra.mrb[60].mxu1 %v1040_v39 }
 0x271   :  { %2614 = vmatprep.mubr.bf16.mxu1 %v1041_v19 }
 0x278   :  { %2615 = vmatmul.mubr.bf16.gmra.mrb[64].mxu1 %v3896_v25 }
 0x279   :  { %2618 = vmatprep.mubr.bf16.mxu1 %v3901_v10 }
 0x280   :  { %2619 = vmatmul.mubr.bf16.gmra.mrb[68].mxu1 %v3906_v20 }
 0x281   :  { %2622 = vmatprep.mubr.bf16.mxu1 %v3908_v18 }
 0x288   :  { %2623 = vmatmul.mubr.bf16.gmra.mrb[72].mxu1 %v3912_v35 }
 0x289   :  { %2626 = vmatprep.mubr.bf16.mxu1 %v3917_v21 }
 0x290   :  { %2627 = vmatmul.mubr.bf16.gmra.mrb[76].mxu1 %v3922_v3 }
 0x291   :  { %2630 = vmatprep.mubr.bf16.mxu1 %v3924_v37 }
 0x298   :  { %2631 = vmatmul.mubr.bf16.gmra.mrb[80].mxu1 %v3928_v8 }
 0x299   :  { %2634 = vmatprep.mubr.bf16.mxu1 %v3933_v41 }
 0x2a0   :  { %2635 = vmatmul.mubr.bf16.gmra.mrb[84].mxu1 %v3938_v46 }
 0x2a1   :  { %2638 = vmatprep.mubr.bf16.mxu1 %v3940_v28 }
 0x2a8   :  { %2639 = vmatmul.mubr.bf16.gmra.mrb[88].mxu1 %v3946_v59 }
 0x2a9   :  { %2642 = vmatprep.mubr.bf16.mxu1 %v3953_v24 }
 0x2b0   :  { %2643 = vmatmul.mubr.bf16.gmra.mrb[92].mxu1 %v3955_v16 }
 0x30b   :  { %v4015_v7 = vpop.f32.mrb[32].mxu1 }
 0x30c   :  { %v4017_v25 = vpop.f32.mrb[33].mxu1 }
 0x30d   :  { %v4019_v10 = vpop.f32.mrb[34].mxu1 }
 0x30e   :  { %v4021_v20 = vpop.f32.mrb[35].mxu1 }
 0x30f   :  { %v1412_v18 = vadd.f32 %v4021_v20, %v4017_v25 }
 0x311   :  { %v1413_v35 = vadd.f32 %v4015_v7, %v1412_v18 }
 0x313   :  { %v4026_v21 = vpop.f32.mrb[36].mxu1  ;;  %v1414_v3 = vadd.f32 %v4019_v10, %v1413_v35 }
 0x314   :  { %v4029_v37 = vpop.f32.mrb[37].mxu1 }
 0x315   :  { %v1415_v8 = vadd.f32 %v1414_v3, %v4029_v37  ;;  %v4032_v41 = vpop.f32.mrb[38].mxu1 }
 0x316   :  { %v4034_v46 = vpop.f32.mrb[39].mxu1 }
 0x317   :  { %v1416_v28 = vadd.f32 %v1415_v8, %v4034_v46 }
 0x319   :  { %v1417_v59 = vadd.f32 %v4026_v21, %v1416_v28 }
 0x31b   :  { %v4038_v24 = vpop.f32.mrb[40].mxu1  ;;  %v1418_v16 = vadd.f32 %v4032_v41, %v1417_v59 }
 0x31c   :  { %v4041_v14 = vpop.f32.mrb[41].mxu1 }
 0x31d   :  { %v1419_v2 = vadd.f32 %v1418_v16, %v4041_v14  ;;  %v4044_v42 = vpop.f32.mrb[42].mxu1 }
 0x31e   :  { %v4046_v26 = vpop.f32.mrb[43].mxu1 }
 0x31f   :  { %v1420_v50 = vadd.f32 %v1419_v2, %v4046_v26 }
 0x321   :  { %v1421_v6 = vadd.f32 %v4038_v24, %v1420_v50 }
 0x323   :  { %v4050_v23 = vpop.f32.mrb[44].mxu1  ;;  %v1422_v31 = vadd.f32 %v4044_v42, %v1421_v6 }
 0x324   :  { %v4053_v62 = vpop.f32.mrb[45].mxu1 }
 0x325   :  { %v1423_v54 = vadd.f32 %v1422_v31, %v4053_v62  ;;  %v4056_v34 = vpop.f32.mrb[46].mxu1 }
 0x326   :  { %v4058_v36 = vpop.f32.mrb[47].mxu1 }
 0x327   :  { %v1424_v44 = vadd.f32 %v1423_v54, %v4058_v36 }
 0x329   :  { %v1425_v49 = vadd.f32 %v4050_v23, %v1424_v44 }
 0x32b   :  { %v4062_v15 = vpop.f32.mrb[48].mxu1  ;;  %v1426_v58 = vadd.f32 %v4056_v34, %v1425_v49 }
 0x32c   :  { %v4065_v38 = vpop.f32.mrb[49].mxu1 }
 0x32d   :  { %v1427_v30 = vadd.f32 %v1426_v58, %v4065_v38  ;;  %v4068_v33 = vpop.f32.mrb[50].mxu1 }
 0x32e   :  { %v4070_v48 = vpop.f32.mrb[51].mxu1 }
 0x32f   :  { %v1428_v40 = vadd.f32 %v1427_v30, %v4070_v48 }
 0x331   :  { %v1429_v53 = vadd.f32 %v4062_v15, %v1428_v40 }
 0x333   :  { %v4074_v45 = vpop.f32.mrb[52].mxu1  ;;  %v1430_v55 = vadd.f32 %v4068_v33, %v1429_v53 }
 0x334   :  { %v4077_v60 = vpop.f32.mrb[53].mxu1 }
 0x335   :  { %v1431_v27 = vadd.f32 %v1430_v55, %v4077_v60  ;;  %v4080_v32 = vpop.f32.mrb[54].mxu1 }
 0x336   :  { %v4082_v52 = vpop.f32.mrb[55].mxu1 }
 0x337   :  { %v1432_v4 = vadd.f32 %v1431_v27, %v4082_v52 }
 0x339   :  { %v1433_v12 = vadd.f32 %v4074_v45, %v1432_v4 }
 0x33b   :  { %v4086_v57 = vpop.f32.mrb[56].mxu1  ;;  %v1434_v29 = vadd.f32 %v4080_v32, %v1433_v12 }
 0x33c   :  { %v4089_v1 = vpop.f32.mrb[57].mxu1 }
 0x33d   :  { %v1435_v17 = vadd.f32 %v1434_v29, %v4089_v1  ;;  %v4092_v9 = vpop.f32.mrb[58].mxu1 }
 0x33e   :  { %v4094_v47 = vpop.f32.mrb[59].mxu1 }
 0x33f   :  { %v1436_v56 = vadd.f32 %v1435_v17, %v4094_v47 }
 0x341   :  { %v1437_v51 = vadd.f32 %v4086_v57, %v1436_v56 }
 0x343   :  { %v4098_v61 = vpop.f32.mrb[60].mxu1  ;;  %v1438_v0 = vadd.f32 %v4092_v9, %v1437_v51 }
 0x344   :  { %v4101_v13 = vpop.f32.mrb[61].mxu1 }
 0x345   :  { %v1439_v63 = vadd.f32 %v1438_v0, %v4101_v13  ;;  %v4104_v5 = vpop.f32.mrb[62].mxu1 }
 0x346   :  { %v4106_v11 = vpop.f32.mrb[63].mxu1 }
 0x347   :  { %v1440_v22 = vadd.f32 %v1439_v63, %v4106_v11 }
 0x349   :  { %v1441_v39 = vadd.f32 %v4098_v61, %v1440_v22 }
 0x34b   :  { %v4110_v19 = vpop.f32.mrb[64].mxu1  ;;  %v1442_v18 = vadd.f32 %v4104_v5, %v1441_v39 }
 0x34c   :  { %v4113_v35 = vpop.f32.mrb[65].mxu1 }
 0x34d   :  { %v1443_v3 = vadd.f32 %v1442_v18, %v4113_v35  ;;  %v4116_v8 = vpop.f32.mrb[66].mxu1 }
 0x34e   :  { %v4118_v28 = vpop.f32.mrb[67].mxu1 }
 0x34f   :  { %v1444_v59 = vadd.f32 %v1443_v3, %v4118_v28 }
 0x351   :  { %v1445_v16 = vadd.f32 %v4110_v19, %v1444_v59 }
 0x353   :  { %v4122_v2 = vpop.f32.mrb[68].mxu1  ;;  %v1446_v50 = vadd.f32 %v4116_v8, %v1445_v16 }
 0x354   :  { %v4125_v6 = vpop.f32.mrb[69].mxu1 }
 0x355   :  { %v1447_v31 = vadd.f32 %v1446_v50, %v4125_v6  ;;  %v4128_v54 = vpop.f32.mrb[70].mxu1 }
 0x356   :  { %v4130_v44 = vpop.f32.mrb[71].mxu1 }
 0x357   :  { %v1448_v49 = vadd.f32 %v1447_v31, %v4130_v44 }
 0x359   :  { %v1449_v58 = vadd.f32 %v4122_v2, %v1448_v49 }
 0x35b   :  { %v4134_v30 = vpop.f32.mrb[72].mxu1  ;;  %v1450_v40 = vadd.f32 %v4128_v54, %v1449_v58 }
 0x35c   :  { %v4137_v53 = vpop.f32.mrb[73].mxu1 }
 0x35d   :  { %v1451_v55 = vadd.f32 %v1450_v40, %v4137_v53  ;;  %v4140_v27 = vpop.f32.mrb[74].mxu1 }
 0x35e   :  { %v4142_v4 = vpop.f32.mrb[75].mxu1 }
 0x35f   :  { %v1452_v12 = vadd.f32 %v1451_v55, %v4142_v4 }
 0x361   :  { %v1453_v29 = vadd.f32 %v4134_v30, %v1452_v12 }
 0x363   :  { %v4146_v17 = vpop.f32.mrb[76].mxu1  ;;  %v1454_v56 = vadd.f32 %v4140_v27, %v1453_v29 }
 0x364   :  { %v4149_v51 = vpop.f32.mrb[77].mxu1 }
 0x365   :  { %v1455_v0 = vadd.f32 %v1454_v56, %v4149_v51  ;;  %v4152_v63 = vpop.f32.mrb[78].mxu1 }
 0x366   :  { %v4154_v22 = vpop.f32.mrb[79].mxu1 }
 0x367   :  { %v1456_v39 = vadd.f32 %v1455_v0, %v4154_v22 }
 0x369   :  { %v1457_v18 = vadd.f32 %v4146_v17, %v1456_v39 }
 0x36b   :  { %v4158_v3 = vpop.f32.mrb[80].mxu1  ;;  %v1458_v59 = vadd.f32 %v4152_v63, %v1457_v18 }
 0x36c   :  { %5424 = vst [vmem:[#allocation25_spill] sm:$0xff] %v4158_v3  ;;  %v4161_v16 = vpop.f32.mrb[81].mxu1 }
 0x36d   :  { %5425 = vst [vmem:[#allocation26_spill] sm:$0xff] %v4161_v16  ;;  %v1459_v50 = vadd.f32 %v1458_v59, %v4161_v16  ;;  %v4164_v31 = vpop.f32.mrb[82].mxu1 }
 0x36e   :  { %5426 = vst [vmem:[#allocation27_spill] sm:$0xff] %v4164_v31  ;;  %v4166_v49 = vpop.f32.mrb[83].mxu1 }
 0x36f   :  { %5427 = vst [vmem:[#allocation10_spill] sm:$0xff] %v4166_v49  ;;  %v1460_v58 = vadd.f32 %v1459_v50, %v4166_v49 }
 0x371   :  { %v1461_v40 = vadd.f32 %v4158_v3, %v1460_v58 }
 0x373   :  { %v4170_v55 = vpop.f32.mrb[84].mxu1  ;;  %v1462_v12 = vadd.f32 %v4164_v31, %v1461_v40 }
 0x374   :  { %5428 = vst [vmem:[#allocation5_spill] sm:$0xff] %v4170_v55  ;;  %v4173_v29 = vpop.f32.mrb[85].mxu1 }
 0x375   :  { %5429 = vst [vmem:[#allocation8_spill] sm:$0xff] %v4173_v29  ;;  %v1463_v56 = vadd.f32 %v1462_v12, %v4173_v29  ;;  %v4176_v0 = vpop.f32.mrb[86].mxu1 }
 0x376   :  { %5430 = vst [vmem:[#allocation13_spill] sm:$0xff] %v4176_v0  ;;  %v4178_v39 = vpop.f32.mrb[87].mxu1 }
 0x377   :  { %5431 = vst [vmem:[#allocation17_spill] sm:$0xff] %v4178_v39  ;;  %v1464_v18 = vadd.f32 %v1463_v56, %v4178_v39 }
 0x379   :  { %v1465_v59 = vadd.f32 %v4170_v55, %v1464_v18 }
 0x37b   :  { %v4182_v43 = vpop.f32.mrb[88].mxu1  ;;  %v1466_v50 = vadd.f32 %v4176_v0, %v1465_v59 }
 0x37c   :  { %5432 = vst [vmem:[#allocation18_spill] sm:$0xff] %v4182_v43  ;;  %v4185_v58 = vpop.f32.mrb[89].mxu1 }
 0x37d   :  { %5433 = vst [vmem:[#allocation19_spill] sm:$0xff] %v4185_v58  ;;  %v1467_v40 = vadd.f32 %v1466_v50, %v4185_v58  ;;  %v4188_v31 = vpop.f32.mrb[90].mxu1 }
 0x37e   :  { %5434 = vst [vmem:[#allocation20_spill] sm:$0xff] %v4188_v31  ;;  %v4190_v3 = vpop.f32.mrb[91].mxu1 }
 0x37f   :  { %5435 = vst [vmem:[#allocation21_spill] sm:$0xff] %v4190_v3  ;;  %v1468_v12 = vadd.f32 %v1467_v40, %v4190_v3 }
 0x381   :  { %v1469_v29 = vadd.f32 %v4182_v43, %v1468_v12 }
 0x383   :  { %v4194_v49 = vpop.f32.mrb[92].mxu1  ;;  %v1470_v56 = vadd.f32 %v4188_v31, %v1469_v29 }
 0x384   :  { %v4197_v18 = vpop.f32.mrb[93].mxu1 }
 0x385   :  { %5436 = vst [vmem:[#allocation22_spill] sm:$0xff] %v4197_v18  ;;  %v1471_v59 = vadd.f32 %v1470_v56, %v4197_v18  ;;  %v4200_v0 = vpop.f32.mrb[94].mxu1 }
 0x386   :  { %v4202_v55 = vpop.f32.mrb[95].mxu1 }
 0x387   :  { %v1472_v50 = vadd.f32 %v1471_v59, %v4202_v55 }
 0x389   :  { %v1473_v58 = vadd.f32 %v4194_v49, %v1472_v50  ;;  %v5461_v50 = vld [vmem:[#allocation27_spill] sm:$0xff] }
 0x38b   :  { %v1474_v40 = vadd.f32 %v4200_v0, %v1473_v58  ;;  %v5459_v58 = vld [vmem:[#allocation25_spill] sm:$0xff] }
 0x38d   :  { %v1475_v3 = vrot.slane %v1474_v40, 4 }
 0x38f   :  { %v1476_v12 = vadd.f32 %v1475_v3, %v1474_v40  ;;  %v5463_v40 = vld [vmem:[#allocation8_spill] sm:$0xff] }
 0x391   :  { %v1477_v43 = vrot.slane %v1476_v12, 2 }
 0x393   :  { %v1478_v39 = vadd.f32 %v1477_v43, %v1476_v12  ;;  %v5465_v12 = vld [vmem:[#allocation17_spill] sm:$0xff] }
 0x395   :  { %v1479_v16 = vrot.slane %v1478_v39, 1 }
 0x397   :  { %v1480_v29 = vadd.f32 %v1479_v16, %v1478_v39  ;;  %v5456_v16 = vld [vmem:[#allocation26_spill] sm:$0xff] }
 0x398   :  { %v5457_v39 = vld [vmem:[#allocation10_spill] sm:$0xff] }
 0x399   :  { %v4207_v31 = vmul.f32 0.001953125, %v1480_v29 }
 0x39b   :  { %v4211_v56 = vsub.f32 %v4017_v25, %v4207_v31  ;;  %v4215_v18 = vsub.f32 %v4021_v20, %v4207_v31  ;;  %v4219_v59 = vsub.f32 %v4015_v7, %v4207_v31  ;;  %v4223_v3 = vsub.f32 %v4019_v10, %v4207_v31 }
 0x39c   :  { %v4227_v43 = vsub.f32 %v4029_v37, %v4207_v31  ;;  %v4231_v25 = vsub.f32 %v4034_v46, %v4207_v31  ;;  %v4235_v20 = vsub.f32 %v4026_v21, %v4207_v31  ;;  %v4239_v7 = vsub.f32 %v4032_v41, %v4207_v31 }
 0x39d   :  { %5437 = vst [vmem:[#allocation3_spill] sm:$0xff] %v4211_v56  ;;  %5438 = vst [vmem:[#allocation4_spill] sm:$0xff] %v4215_v18  ;;  %v4243_v10 = vsub.f32 %v4041_v14, %v4207_v31  ;;  %v4247_v37 = vsub.f32 %v4046_v26, %v4207_v31  ;;  %v4251_v46 = vsub.f32 %v4038_v24, %v4207_v31 }
 0x39e   :  { %5439 = vst [vmem:[#allocation7_spill] sm:$0xff] %v4219_v59  ;;  %v4255_v21 = vsub.f32 %v4044_v42, %v4207_v31  ;;  %v4259_v41 = vsub.f32 %v4053_v62, %v4207_v31  ;;  %v4263_v14 = vsub.f32 %v4058_v36, %v4207_v31  ;;  %v4267_v26 = vsub.f32 %v4050_v23, %v4207_v31 }
 0x39f   :  { %v4271_v24 = vsub.f32 %v4056_v34, %v4207_v31  ;;  %v4275_v42 = vsub.f32 %v4065_v38, %v4207_v31  ;;  %v4279_v62 = vsub.f32 %v4070_v48, %v4207_v31  ;;  %v4283_v36 = vsub.f32 %v4062_v15, %v4207_v31 }
 0x3a0   :  { %v4287_v23 = vsub.f32 %v4068_v33, %v4207_v31  ;;  %v4291_v34 = vsub.f32 %v4077_v60, %v4207_v31  ;;  %v4295_v38 = vsub.f32 %v4082_v52, %v4207_v31  ;;  %v4299_v48 = vsub.f32 %v4074_v45, %v4207_v31 }
 0x3a1   :  { %5440 = vst [vmem:[#allocation11_spill] sm:$0xff] %v4283_v36  ;;  %v4303_v15 = vsub.f32 %v4080_v32, %v4207_v31  ;;  %v4307_v33 = vsub.f32 %v4089_v1, %v4207_v31  ;;  %v4311_v60 = vsub.f32 %v4094_v47, %v4207_v31  ;;  %v4315_v52 = vsub.f32 %v4086_v57, %v4207_v31 }
 0x3a2   :  { %5441 = vst [vmem:[#allocation6_spill] sm:$0xff] %v4287_v23  ;;  %5442 = vst [vmem:[#allocation9_spill] sm:$0xff] %v4291_v34  ;;  %v4319_v45 = vsub.f32 %v4092_v9, %v4207_v31  ;;  %v4323_v32 = vsub.f32 %v4101_v13, %v4207_v31  ;;  %v4327_v1 = vsub.f32 %v4106_v11, %v4207_v31 }
 0x3a3   :  { %5443 = vst [vmem:[#allocation14_spill] sm:$0xff] %v4295_v38  ;;  %5444 = vst [vmem:[#allocation16_spill] sm:$0xff] %v4299_v48  ;;  %v4331_v47 = vsub.f32 %v4098_v61, %v4207_v31  ;;  %v4335_v57 = vsub.f32 %v4104_v5, %v4207_v31  ;;  %v4339_v9 = vsub.f32 %v4113_v35, %v4207_v31 }
 0x3a4   :  { %5445 = vst [vmem:[#allocation12_spill] sm:$0xff] %v4303_v15  ;;  %5446 = vst [vmem:[#allocation15_spill] sm:$0xff] %v4307_v33  ;;  %v4343_v13 = vsub.f32 %v4118_v28, %v4207_v31  ;;  %v4347_v11 = vsub.f32 %v4110_v19, %v4207_v31  ;;  %v4351_v61 = vsub.f32 %v4116_v8, %v4207_v31 }
 0x3a5   :  { %5447 = vst [vmem:[#allocation2_spill] sm:$0xff] %v4311_v60  ;;  %5448 = vst [vmem:[#allocation23_spill] sm:$0xff] %v4315_v52  ;;  %v4355_v5 = vsub.f32 %v4125_v6, %v4207_v31  ;;  %v4359_v35 = vsub.f32 %v4130_v44, %v4207_v31  ;;  %v4363_v28 = vsub.f32 %v4122_v2, %v4207_v31 }
 0x3a6   :  { %5449 = vst [vmem:[#allocation28_spill] sm:$0xff] %v4319_v45  ;;  %5450 = vst [vmem:[#allocation29_spill] sm:$0xff] %v4323_v32  ;;  %v4367_v19 = vsub.f32 %v4128_v54, %v4207_v31  ;;  %v4371_v8 = vsub.f32 %v4137_v53, %v4207_v31  ;;  %v4375_v6 = vsub.f32 %v4142_v4, %v4207_v31 }
 0x3a7   :  { %5451 = vst [vmem:[#allocation30_spill] sm:$0xff] %v4327_v1  ;;  %5452 = vst [vmem:[#allocation31_spill] sm:$0xff] %v4331_v47  ;;  %v4379_v44 = vsub.f32 %v4134_v30, %v4207_v31  ;;  %v4383_v2 = vsub.f32 %v4140_v27, %v4207_v31  ;;  %v4387_v54 = vsub.f32 %v4149_v51, %v4207_v31 }
 0x3a8   :  { %5453 = vst [vmem:[#allocation32_spill] sm:$0xff] %v4335_v57  ;;  %5454 = vst [vmem:[#allocation33_spill] sm:$0xff] %v4339_v9  ;;  %v4391_v53 = vsub.f32 %v4154_v22, %v4207_v31  ;;  %v4395_v4 = vsub.f32 %v4146_v17, %v4207_v31  ;;  %v4399_v30 = vsub.f32 %v4152_v63, %v4207_v31 }
 0x3a9   :  { %5455 = vst [vmem:[#allocation34_spill] sm:$0xff] %v4343_v13  ;;  %v4403_v27 = vsub.f32 %v5456_v16, %v4207_v31  ;;  %v4407_v51 = vsub.f32 %v5457_v39, %v4207_v31  ;;  %v4411_v22 = vsub.f32 %v5459_v58, %v4207_v31  ;;  %v4415_v17 = vsub.f32 %v5461_v50, %v4207_v31  ;;  %v5467_v16 = vld [vmem:[#allocation5_spill] sm:$0xff] }
 0x3aa   :  { %v4419_v63 = vsub.f32 %v5463_v40, %v4207_v31  ;;  %v4423_v29 = vsub.f32 %v5465_v12, %v4207_v31  ;;  %v4427_v39 = vsub.f32 %v5467_v16, %v4207_v31 }
 0x3ab   :  { %5458 = vst [vmem:[#allocation26_spill] sm:$0xff] %v4407_v51  ;;  %5460 = vst [vmem:[#allocation10_spill] sm:$0xff] %v4411_v22  ;;  %v5469_v51 = vld [vmem:[#allocation13_spill] sm:$0xff]  ;;  %v5470_v22 = vld [vmem:[#allocation19_spill] sm:$0xff] }
 0x3ac   :  { %5462 = vst [vmem:[#allocation25_spill] sm:$0xff] %v4415_v17  ;;  %5464 = vst [vmem:[#allocation27_spill] sm:$0xff] %v4419_v63  ;;  %v4431_v58 = vsub.f32 %v5469_v51, %v4207_v31  ;;  %v4435_v50 = vsub.f32 %v5470_v22, %v4207_v31  ;;  %v5471_v17 = vld [vmem:[#allocation21_spill] sm:$0xff]  ;;  %v5472_v63 = vld [vmem:[#allocation18_spill] sm:$0xff]  ;;  %v4455_v22 = vsub.f32 %v4202_v55, %v4207_v31 }
 0x3ad   :  { %5466 = vst [vmem:[#allocation8_spill] sm:$0xff] %v4423_v29  ;;  %5468 = vst [vmem:[#allocation17_spill] sm:$0xff] %v4427_v39  ;;  %v4439_v40 = vsub.f32 %v5471_v17, %v4207_v31  ;;  %v4443_v12 = vsub.f32 %v5472_v63, %v4207_v31  ;;  %v5473_v29 = vld [vmem:[#allocation20_spill] sm:$0xff]  ;;  %v5475_v39 = vld [vmem:[#allocation22_spill] sm:$0xff]  ;;  %v4459_v17 = vsub.f32 %v4194_v49, %v4207_v31 }
 0x3ae   :  { %v4447_v16 = vsub.f32 %v5473_v29, %v4207_v31  ;;  %v4451_v51 = vsub.f32 %v5475_v39, %v4207_v31  ;;  %5477 = vst [vmem:[#allocation19_spill] sm:$0xff] %v4455_v22  ;;  %v4463_v63 = vsub.f32 %v4200_v0, %v4207_v31  ;;  %v1546_v29 = vmul.f32 %v4211_v56, %v4211_v56 }
 0x3af   :  { %5478 = vst [vmem:[#allocation21_spill] sm:$0xff] %v4459_v17  ;;  %v1548_v39 = vmul.f32 %v4219_v59, %v4219_v59  ;;  %v1549_v55 = vmul.f32 %v4223_v3, %v4223_v3  ;;  %v1550_v49 = vmul.f32 %v4227_v43, %v4227_v43  ;;  %v1551_v31 = vmul.f32 %v4231_v25, %v4231_v25 }
 0x3b0   :  { %5474 = vst [vmem:[#allocation5_spill] sm:$0xff] %v4447_v16  ;;  %5476 = vst [vmem:[#allocation13_spill] sm:$0xff] %v4451_v51  ;;  %v1547_v16 = vmul.f32 %v4215_v18, %v4215_v18  ;;  %v1552_v56 = vmul.f32 %v4235_v20, %v4235_v20  ;;  %v1553_v59 = vmul.f32 %v4239_v7, %v4239_v7 }
 0x3b2   :  { %v1610_v51 = vadd.f32 %v1547_v16, %v1546_v29  ;;  %v1554_v29 = vmul.f32 %v4243_v10, %v4243_v10 }
 0x3b4   :  { %v1611_v22 = vadd.f32 %v1610_v51, %v1548_v39  ;;  %v1555_v39 = vmul.f32 %v4247_v37, %v4247_v37 }
 0x3b6   :  { %v1612_v17 = vadd.f32 %v1611_v22, %v1549_v55  ;;  %v1556_v55 = vmul.f32 %v4251_v46, %v4251_v46 }
 0x3b8   :  { %v1613_v0 = vadd.f32 %v1612_v17, %v1550_v49  ;;  %v1557_v49 = vmul.f32 %v4255_v21, %v4255_v21 }
 0x3ba   :  { %v1614_v18 = vadd.f32 %v1613_v0, %v1551_v31  ;;  %v1558_v0 = vmul.f32 %v4259_v41, %v4259_v41 }
 0x3bc   :  { %v1615_v16 = vadd.f32 %v1614_v18, %v1552_v56  ;;  %v1559_v56 = vmul.f32 %v4263_v14, %v4263_v14 }
 0x3be   :  { %v1616_v51 = vadd.f32 %v1615_v16, %v1553_v59  ;;  %v1560_v16 = vmul.f32 %v4267_v26, %v4267_v26 }
 0x3c0   :  { %v1617_v22 = vadd.f32 %v1616_v51, %v1554_v29  ;;  %v1561_v51 = vmul.f32 %v4271_v24, %v4271_v24 }
 0x3c2   :  { %v1618_v17 = vadd.f32 %v1617_v22, %v1555_v39  ;;  %v1562_v22 = vmul.f32 %v4275_v42, %v4275_v42 }
 0x3c4   :  { %v1619_v31 = vadd.f32 %v1618_v17, %v1556_v55  ;;  %v1563_v17 = vmul.f32 %v4279_v62, %v4279_v62 }
 0x3c6   :  { %v1620_v18 = vadd.f32 %v1619_v31, %v1557_v49  ;;  %v1564_v31 = vmul.f32 %v4283_v36, %v4283_v36 }
 0x3c8   :  { %v1621_v59 = vadd.f32 %v1620_v18, %v1558_v0  ;;  %v1565_v18 = vmul.f32 %v4287_v23, %v4287_v23 }
 0x3ca   :  { %v1622_v29 = vadd.f32 %v1621_v59, %v1559_v56  ;;  %v2740_v59 = vld [vmem:[%s5249_s7] sm:$0xff]  }
 0x3cb   :  { %2646 = vmatprep.subr.bf16.mxu0 %v2740_v59 }
 0x3cc   :  { %v1623_v39 = vadd.f32 %v1622_v29, %v1560_v16  ;;  %v1566_v16 = vmul.f32 %v4291_v34, %v4291_v34  ;;  %2647 = vmatpush3.bf16.msra.mxu0 %v2740_v59  ;;  %v1571_v59 = vmul.f32 %v4311_v60, %v4311_v60 }
 0x3ce   :  { %v1624_v55 = vadd.f32 %v1623_v39, %v1561_v51  ;;  %v1567_v51 = vmul.f32 %v4295_v38, %v4295_v38 }
 0x3d0   :  { %v1625_v49 = vadd.f32 %v1624_v55, %v1562_v22  ;;  %v2741_v22 = vld [vmem:[%s5249_s7 + $0x8] sm:$0xff]   ;;  %v1568_v55 = vmul.f32 %v4299_v48, %v4299_v48 }
 0x3d1   :  { %2648 = vmatprep.subr.bf16.mxu0 %v2741_v22 }
 0x3d2   :  { %v1626_v0 = vadd.f32 %v1625_v49, %v1563_v17  ;;  %2649 = vmatpush3.bf16.msra.mxu0 %v2741_v22  ;;  %v1569_v49 = vmul.f32 %v4303_v15, %v4303_v15  ;;  %v1573_v22 = vmul.f32 %v4319_v45, %v4319_v45 }
 0x3d4   :  { %v1627_v56 = vadd.f32 %v1626_v0, %v1564_v31  ;;  %v2742_v0 = vld [vmem:[%s5249_s7 + $0x10] sm:$0xff]  }
 0x3d5   :  { %2650 = vmatprep.subr.bf16.mxu0 %v2742_v0 }
 0x3d6   :  { %v1628_v29 = vadd.f32 %v1627_v56, %v1565_v18  ;;  %v1570_v18 = vmul.f32 %v4307_v33, %v4307_v33  ;;  %2651 = vmatpush3.bf16.msra.mxu0 %v2742_v0  ;;  %v1575_v0 = vmul.f32 %v4327_v1, %v4327_v1 }
 0x3d8   :  { %v1629_v39 = vadd.f32 %v1628_v29, %v1566_v16  ;;  %v2743_v29 = vld [vmem:[%s5249_s7 + $0x18] sm:$0xff]  }
 0x3d9   :  { %2652 = vmatprep.subr.bf16.mxu0 %v2743_v29 }
 0x3da   :  { %v1630_v17 = vadd.f32 %v1629_v39, %v1567_v51  ;;  %v1572_v51 = vmul.f32 %v4315_v52, %v4315_v52  ;;  %2653 = vmatpush3.bf16.msra.mxu0 %v2743_v29  ;;  %v1577_v29 = vmul.f32 %v4335_v57, %v4335_v57 }
 0x3dc   :  { %v1631_v31 = vadd.f32 %v1630_v17, %v1568_v55  ;;  %v2744_v17 = vld [vmem:[%s5249_s7 + $0x20] sm:$0xff]  }
 0x3dd   :  { %2654 = vmatprep.subr.bf16.mxu0 %v2744_v17 }
 0x3de   :  { %v1632_v56 = vadd.f32 %v1631_v31, %v1569_v49  ;;  %v1574_v49 = vmul.f32 %v4323_v32, %v4323_v32  ;;  %2655 = vmatpush3.bf16.msra.mxu0 %v2744_v17  ;;  %v1579_v17 = vmul.f32 %v4343_v13, %v4343_v13 }
 0x3e0   :  { %v1633_v16 = vadd.f32 %v1632_v56, %v1570_v18  ;;  %v2745_v56 = vld [vmem:[%s5249_s7 + $0x28] sm:$0xff]  }
 0x3e1   :  { %2656 = vmatprep.subr.bf16.mxu0 %v2745_v56 }
 0x3e2   :  { %v1634_v39 = vadd.f32 %v1633_v16, %v1571_v59  ;;  %v1576_v59 = vmul.f32 %v4331_v47, %v4331_v47  ;;  %2657 = vmatpush3.bf16.msra.mxu0 %v2745_v56  ;;  %v1581_v56 = vmul.f32 %v4351_v61, %v4351_v61 }
 0x3e4   :  { %v1635_v55 = vadd.f32 %v1634_v39, %v1572_v51  ;;  %v2746_v39 = vld [vmem:[%s5249_s7 + $0x30] sm:$0xff]  }
 0x3e5   :  { %2658 = vmatprep.subr.bf16.mxu0 %v2746_v39 }
 0x3e6   :  { %v1636_v31 = vadd.f32 %v1635_v55, %v1573_v22  ;;  %v1578_v22 = vmul.f32 %v4339_v9, %v4339_v9  ;;  %2659 = vmatpush3.bf16.msra.mxu0 %v2746_v39 }
 0x3e8   :  { %v1637_v18 = vadd.f32 %v1636_v31, %v1574_v49  ;;  %v2747_v31 = vld [vmem:[%s5249_s7 + $0x38] sm:$0xff]  }
 0x3e9   :  { %2660 = vmatprep.subr.bf16.mxu0 %v2747_v31 }
 0x3ea   :  { %v1638_v16 = vadd.f32 %v1637_v18, %v1575_v0  ;;  %v1580_v0 = vmul.f32 %v4347_v11, %v4347_v11  ;;  %2661 = vmatpush3.bf16.msra.mxu0 %v2747_v31  ;;  %v1586_v31 = vmul.f32 %v4371_v8, %v4371_v8 }
 0x3ec   :  { %v1639_v51 = vadd.f32 %v1638_v16, %v1576_v59  ;;  %v1582_v16 = vmul.f32 %v4355_v5, %v4355_v5 }
 0x3ee   :  { %v1640_v55 = vadd.f32 %v1639_v51, %v1577_v29  ;;  %v1583_v51 = vmul.f32 %v4359_v35, %v4359_v35 }
 0x3f0   :  { %v1641_v49 = vadd.f32 %v1640_v55, %v1578_v22  ;;  %v1584_v22 = vmul.f32 %v4363_v28, %v4363_v28 }
 0x3f2   :  { %v1642_v18 = vadd.f32 %v1641_v49, %v1579_v17  ;;  %v1585_v17 = vmul.f32 %v4367_v19, %v4367_v19 }
 0x3f4   :  { %v1643_v59 = vadd.f32 %v1642_v18, %v1580_v0  ;;  %v1587_v18 = vmul.f32 %v4375_v6, %v4375_v6 }
 0x3f6   :  { %v1644_v29 = vadd.f32 %v1643_v59, %v1581_v56  ;;  %v1588_v59 = vmul.f32 %v4379_v44, %v4379_v44 }
 0x3f8   :  { %v1645_v39 = vadd.f32 %v1644_v29, %v1582_v16  ;;  %v1589_v29 = vmul.f32 %v4383_v2, %v4383_v2 }
 0x3fa   :  { %v1646_v55 = vadd.f32 %v1645_v39, %v1583_v51  ;;  %v1590_v39 = vmul.f32 %v4387_v54, %v4387_v54 }
 0x3fc   :  { %v1647_v49 = vadd.f32 %v1646_v55, %v1584_v22  ;;  %v1591_v55 = vmul.f32 %v4391_v53, %v4391_v53 }
 0x3fe   :  { %v1648_v0 = vadd.f32 %v1647_v49, %v1585_v17  ;;  %v1592_v49 = vmul.f32 %v4395_v4, %v4395_v4 }
 0x400   :  { %v1649_v56 = vadd.f32 %v1648_v0, %v1586_v31  ;;  %v1593_v0 = vmul.f32 %v4399_v30, %v4399_v30 }
 0x402   :  { %v1650_v16 = vadd.f32 %v1649_v56, %v1587_v18  ;;  %v1594_v56 = vmul.f32 %v4403_v27, %v4403_v27 }
 0x404   :  { %v1651_v51 = vadd.f32 %v1650_v16, %v1588_v59  ;;  %v5479_v16 = vld [vmem:[#allocation26_spill] sm:$0xff] }
 0x405   :  { %v1595_v13 = vmul.f32 %v5479_v16, %v5479_v16 }
 0x406   :  { %v1652_v22 = vadd.f32 %v1651_v51, %v1589_v29  ;;  %v5480_v51 = vld [vmem:[#allocation10_spill] sm:$0xff] }
 0x407   :  { %v1596_v9 = vmul.f32 %v5480_v51, %v5480_v51 }
 0x408   :  { %v1653_v17 = vadd.f32 %v1652_v22, %v1590_v39  ;;  %v5481_v22 = vld [vmem:[#allocation25_spill] sm:$0xff] }
 0x409   :  { %v1597_v57 = vmul.f32 %v5481_v22, %v5481_v22 }
 0x40a   :  { %v1654_v31 = vadd.f32 %v1653_v17, %v1591_v55  ;;  %v5482_v17 = vld [vmem:[#allocation27_spill] sm:$0xff] }
 0x40b   :  { %v1598_v47 = vmul.f32 %v5482_v17, %v5482_v17 }
 0x40c   :  { %v1655_v18 = vadd.f32 %v1654_v31, %v1592_v49  ;;  %v5483_v31 = vld [vmem:[#allocation8_spill] sm:$0xff] }
 0x40d   :  { %v1599_v1 = vmul.f32 %v5483_v31, %v5483_v31 }
 0x40e   :  { %v1656_v59 = vadd.f32 %v1655_v18, %v1593_v0  ;;  %v5484_v18 = vld [vmem:[#allocation17_spill] sm:$0xff] }
 0x40f   :  { %v1600_v32 = vmul.f32 %v5484_v18, %v5484_v18 }
 0x410   :  { %v1657_v29 = vadd.f32 %v1656_v59, %v1594_v56  ;;  %v1601_v59 = vmul.f32 %v4431_v58, %v4431_v58 }
 0x412   :  { %v1658_v39 = vadd.f32 %v1657_v29, %v1595_v13  ;;  %v1602_v29 = vmul.f32 %v4435_v50, %v4435_v50 }
 0x414   :  { %v1659_v55 = vadd.f32 %v1658_v39, %v1596_v9  ;;  %v1603_v39 = vmul.f32 %v4439_v40, %v4439_v40 }
 0x416   :  { %v1660_v49 = vadd.f32 %v1659_v55, %v1597_v57  ;;  %v1604_v55 = vmul.f32 %v4443_v12, %v4443_v12 }
 0x418   :  { %v1661_v0 = vadd.f32 %v1660_v49, %v1598_v47  ;;  %v5485_v49 = vld [vmem:[#allocation5_spill] sm:$0xff] }
 0x419   :  { %v1605_v45 = vmul.f32 %v5485_v49, %v5485_v49 }
 0x41a   :  { %v1662_v56 = vadd.f32 %v1661_v0, %v1599_v1  ;;  %v5486_v0 = vld [vmem:[#allocation13_spill] sm:$0xff] }
 0x41b   :  { %v1606_v52 = vmul.f32 %v5486_v0, %v5486_v0 }
 0x41c   :  { %v1663_v13 = vadd.f32 %v1662_v56, %v1600_v32  ;;  %v5487_v56 = vld [vmem:[#allocation19_spill] sm:$0xff] }
 0x41d   :  { %v1607_v60 = vmul.f32 %v5487_v56, %v5487_v56 }
 0x41e   :  { %v1664_v9 = vadd.f32 %v1663_v13, %v1601_v59  ;;  %v5488_v13 = vld [vmem:[#allocation21_spill] sm:$0xff] }
 0x41f   :  { %v1608_v33 = vmul.f32 %v5488_v13, %v5488_v13 }
 0x420   :  { %v1665_v57 = vadd.f32 %v1664_v9, %v1602_v29  ;;  %v1609_v9 = vmul.f32 %v4463_v63, %v4463_v63 }
 0x422   :  { %v1666_v47 = vadd.f32 %v1665_v57, %v1603_v39 }
 0x424   :  { %v1667_v1 = vadd.f32 %v1666_v47, %v1604_v55 }
 0x426   :  { %v1668_v32 = vadd.f32 %v1667_v1, %v1605_v45 }
 0x428   :  { %v1669_v59 = vadd.f32 %v1668_v32, %v1606_v52  ;;  %v1394_v52 = vld [vmem:[%s5250_s5] sm:$0x1] }
 0x42a   :  { %v1670_v29 = vadd.f32 %v1669_v59, %v1607_v60  ;;  %v5489_v59 = vld [vmem:[#allocation24_spill] sm:$0xff] }
 0x42b   :  { %v5490_v23 = vsub.s32 0, %v5489_v59 }
 0x42c   :  { %v1671_v39 = vadd.f32 %v1670_v29, %v1608_v33  ;;  %v5492_v29 = vld [vmem:[#allocation4_spill] sm:$0xff] }
 0x42e   :  { %v1672_v57 = vadd.f32 %v1671_v39, %v1609_v9  ;;  %v5493_v39 = vld [vmem:[#allocation7_spill] sm:$0xff] }
 0x430   :  { %v1673_v15 = vrot.slane %v1672_v57, 4 }
 0x432   :  { %v1674_v48 = vadd.f32 %v1673_v15, %v1672_v57  ;;  %v4627_v15 = vld [vmem:[%s5251_s6] ss:$0 sm:$0xff] }
 0x434   :  { %v1675_v55 = vrot.slane %v1674_v48, 2 }
 0x436   :  { %v1676_v47 = vadd.f32 %v1675_v55, %v1674_v48  ;;  %v5491_v48 = vld [vmem:[#allocation3_spill] sm:$0xff] }
 0x438   :  { %v1677_v38 = vrot.slane %v1676_v47, 1 }
 0x43a   :  { %v1678_v34 = vadd.f32 %v1677_v38, %v1676_v47 }
 0x43c   :  { %v1679_v45 = vmul.f32 0.001953125, %v1678_v34 }
 0x43e   :  { %v1680_v1 = vadd.f32 1e-05, %v1679_v45 }
 0x440   :  { %2750 = vrsqrt.f32 %v1680_v1 }
 0x44a   :  { %v2751_v32 = vpop.eup %2750 }
 0x44b   :  { %v1682_v60 = vmul.f32 %v2751_v32, %v1394_v52 }
 0x44d   :  { %v4622_v36 = vrot.slane %v1682_v60, %v5490_v23 }
 0x44f   :  { %v1750_v34 = vmul.f32 %v4622_v36, %v5487_v56  ;;  %v1689_v33 = vmul.f32 %v4622_v36, %v5491_v48  ;;  %v1690_v9 = vmul.f32 %v4622_v36, %v5492_v29  ;;  %v1691_v23 = vmul.f32 %v4622_v36, %v5493_v39 }
 0x450   :  { %v1692_v57 = vmul.f32 %v4622_v36, %v4223_v3  ;;  %v1693_v55 = vmul.f32 %v4622_v36, %v4227_v43  ;;  %v1694_v56 = vmul.f32 %v4622_v36, %v4231_v25  ;;  %v4648_v47 = vmul.f32 %v4622_v36, %v4235_v20 }
 0x451   :  { %v4632_v38 = vadd.f32 %v4627_v15, %v1750_v34  ;;  %v4652_v45 = vmul.f32 %v4622_v36, %v4239_v7  ;;  %v4656_v1 = vmul.f32 %v4622_v36, %v4243_v10  ;;  %v4660_v3 = vmul.f32 %v4622_v36, %v4247_v37 }
 0x452   :  { %v4664_v43 = vmul.f32 %v4622_v36, %v4251_v46  ;;  %v1723_v25 = vmul.f32 %v4622_v36, %v4347_v11  ;;  %v1724_v20 = vmul.f32 %v4622_v36, %v4351_v61  ;;  %v1725_v7 = vmul.f32 %v4622_v36, %v4355_v5 }
 0x453   :  { %v1726_v10 = vmul.f32 %v4622_v36, %v4359_v35  ;;  %v1727_v37 = vmul.f32 %v4622_v36, %v4363_v28  ;;  %v1728_v52 = vmul.f32 %v4622_v36, %v4367_v19  ;;  %v1729_v46 = vmul.f32 %v4622_v36, %v4371_v8 }
 0x454   :  { %v1730_v11 = vmul.f32 %v4622_v36, %v4375_v6  ;;  %v1731_v61 = vmul.f32 %v4622_v36, %v4379_v44  ;;  %v1732_v5 = vmul.f32 %v4622_v36, %v4383_v2  ;;  %v1733_v35 = vmul.f32 %v4622_v36, %v4387_v54 }
 0x455   :  { %v1734_v28 = vmul.f32 %v4622_v36, %v4391_v53  ;;  %v1735_v19 = vmul.f32 %v4622_v36, %v4395_v4  ;;  %v1736_v8 = vmul.f32 %v4622_v36, %v4399_v30  ;;  %v1737_v6 = vmul.f32 %v4622_v36, %v4403_v27 }
 0x456   :  { %v1738_v44 = vmul.f32 %v4622_v36, %v5479_v16  ;;  %v1739_v2 = vmul.f32 %v4622_v36, %v5480_v51  ;;  %v1740_v54 = vmul.f32 %v4622_v36, %v5481_v22  ;;  %v1741_v53 = vmul.f32 %v4622_v36, %v5482_v17 }
 0x457   :  { %v1742_v4 = vmul.f32 %v4622_v36, %v5483_v31  ;;  %v1743_v30 = vmul.f32 %v4622_v36, %v5484_v18  ;;  %v1744_v27 = vmul.f32 %v4622_v36, %v4431_v58  ;;  %v1745_v16 = vmul.f32 %v4622_v36, %v4435_v50 }
 0x458   :  { %v1746_v51 = vmul.f32 %v4622_v36, %v4439_v40  ;;  %v1747_v22 = vmul.f32 %v4622_v36, %v4443_v12  ;;  %v1748_v17 = vmul.f32 %v4622_v36, %v5485_v49  ;;  %v1749_v31 = vmul.f32 %v4622_v36, %v5486_v0 }
 0x459   :  { %v1751_v18 = vmul.f32 %v4622_v36, %v5488_v13  ;;  %v1752_v58 = vmul.f32 %v4622_v36, %v4463_v63  ;;  %v1759_v50 = vadd.f32 %v4627_v15, %v1689_v33  ;;  %v1760_v32 = vadd.f32 %v4627_v15, %v1690_v9 }
 0x45a   :  { %v1761_v40 = vadd.f32 %v4627_v15, %v1691_v23  ;;  %v1762_v12 = vadd.f32 %v4627_v15, %v1692_v57  ;;  %v1763_v60 = vadd.f32 %v4627_v15, %v1693_v55  ;;  %v1764_v49 = vadd.f32 %v4627_v15, %v1694_v56 }
 0x45b   :  { %v4731_v0 = vadd.f32 %v4627_v15, %v1723_v25  ;;  %v4734_v13 = vadd.f32 %v4627_v15, %v1724_v20  ;;  %v4737_v63 = vadd.f32 %v4627_v15, %v1725_v7  ;;  %v4740_v59 = vadd.f32 %v4627_v15, %v1726_v10 }
 0x45c   :  { %v4743_v34 = vadd.f32 %v4627_v15, %v1727_v37  ;;  %v4746_v48 = vadd.f32 %v4627_v15, %v1728_v52  ;;  %v4749_v33 = vadd.f32 %v4627_v15, %v1729_v46  ;;  %v4752_v29 = vadd.f32 %v4627_v15, %v1730_v11 }
 0x45d   :  { %v4755_v9 = vadd.f32 %v4627_v15, %v1731_v61  ;;  %v4758_v39 = vadd.f32 %v4627_v15, %v1732_v5  ;;  %v4761_v23 = vadd.f32 %v4627_v15, %v1733_v35  ;;  %v4764_v57 = vadd.f32 %v4627_v15, %v1734_v28 }
 0x45e   :  { %v4767_v55 = vadd.f32 %v4627_v15, %v1735_v19  ;;  %v4770_v56 = vadd.f32 %v4627_v15, %v1736_v8  ;;  %v4773_v25 = vadd.f32 %v4627_v15, %v1737_v6  ;;  %v4776_v20 = vadd.f32 %v4627_v15, %v1738_v44 }
 0x45f   :  { %v4779_v7 = vadd.f32 %v4627_v15, %v1739_v2  ;;  %v4782_v10 = vadd.f32 %v4627_v15, %v1740_v54  ;;  %v4785_v37 = vadd.f32 %v4627_v15, %v1741_v53  ;;  %v4788_v52 = vadd.f32 %v4627_v15, %v1742_v4 }
 0x460   :  { %v4791_v46 = vadd.f32 %v4627_v15, %v1743_v30  ;;  %v4794_v11 = vadd.f32 %v4627_v15, %v1744_v27  ;;  %v4797_v61 = vadd.f32 %v4627_v15, %v1745_v16  ;;  %v4800_v5 = vadd.f32 %v4627_v15, %v1746_v51 }
 0x461   :  { %v4803_v35 = vadd.f32 %v4627_v15, %v1747_v22  ;;  %v4806_v28 = vadd.f32 %v4627_v15, %v1748_v17  ;;  %v4809_v19 = vadd.f32 %v4627_v15, %v1749_v31  ;;  %v4812_v8 = vadd.f32 %v4627_v15, %v1751_v18 }
 0x462   :  { %v4815_v6 = vadd.f32 %v4627_v15, %v1752_v58  ;;  %v1825_v44 = vmax.f32 %v1761_v40, 0.0  ;;  %v1826_v2 = vmax.f32 %v1762_v12, 0.0  ;;  %v1823_v54 = vmax.f32 %v1759_v50, 0.0 }
 0x463   :  { %v1700_v53 = vmul.f32 %v4622_v36, %v4255_v21  ;;  %v1824_v4 = vmax.f32 %v1760_v32, 0.0  ;;  %v1827_v30 = vmax.f32 %v1763_v60, 0.0  ;;  %v1828_v27 = vmax.f32 %v1764_v49, 0.0 }
 0x464   :  { %v1701_v16 = vmul.f32 %v4622_v36, %v4259_v41  ;;  %v1702_v51 = vmul.f32 %v4622_v36, %v4263_v14  ;;  %v1888_v22 = vpack.c.bf16 %v1826_v2, %v1825_v44  ;;  %v1765_v31 = vadd.f32 %v4627_v15, %v4648_v47 }
 0x465   :  { %v1887_v17 = vpack.c.bf16 %v1824_v4, %v1823_v54  ;;  %v1766_v18 = vadd.f32 %v4627_v15, %v4652_v45  ;;  %v1767_v21 = vadd.f32 %v4627_v15, %v4656_v1  ;;  %v1768_v58 = vadd.f32 %v4627_v15, %v4660_v3 }
 0x466   :  { %v1769_v41 = vadd.f32 %v4627_v15, %v4664_v43  ;;  %v1770_v50 = vadd.f32 %v4627_v15, %v1700_v53  ;;  %v1889_v14 = vpack.c.bf16 %v1828_v27, %v1827_v30  ;;  %v1771_v32 = vadd.f32 %v4627_v15, %v1701_v16 }
 0x467   :  { %2662 = vmatprep.mubr.bf16.mxu0 %v1887_v17  ;;  %v1772_v47 = vadd.f32 %v4627_v15, %v1702_v51  ;;  %v1703_v45 = vmul.f32 %v4622_v36, %v4267_v26  ;;  %v1704_v1 = vmul.f32 %v4622_v36, %v4271_v24  ;;  %v1705_v3 = vmul.f32 %v4622_v36, %v4275_v42 }
 0x468   :  { %2663 = vmatmul.mubr.bf16.vlgmr.msra.gmra.mrb[32].mxu0 %v1888_v22  ;;  %v1706_v43 = vmul.f32 %v4622_v36, %v4279_v62  ;;  %v1829_v40 = vmax.f32 %v1765_v31, 0.0  ;;  %v1830_v12 = vmax.f32 %v1766_v18, 0.0  ;;  %v1831_v60 = vmax.f32 %v1767_v21, 0.0 }
 0x469   :  { %2666 = vmatprep.mubr.bf16.mxu0 %v1889_v14  ;;  %v1832_v49 = vmax.f32 %v1768_v58, 0.0  ;;  %v1833_v44 = vmax.f32 %v1769_v41, 0.0  ;;  %v1834_v2 = vmax.f32 %v1770_v50, 0.0  ;;  %v1884_v54 = vmax.f32 %v4632_v38, 0.0 }
 0x46a   :  { %v1835_v53 = vmax.f32 %v1771_v32, 0.0  ;;  %v1836_v26 = vmax.f32 %v1772_v47, 0.0  ;;  %v4846_v4 = vadd.f32 %v4627_v15, %v1703_v45  ;;  %v4849_v24 = vadd.f32 %v4627_v15, %v1704_v1 }
 0x46b   :  { %v4852_v42 = vadd.f32 %v4627_v15, %v1705_v3  ;;  %v4855_v62 = vadd.f32 %v4627_v15, %v1706_v43  ;;  %v1890_v30 = vpack.c.bf16 %v1830_v12, %v1829_v40  ;;  %v1891_v27 = vpack.c.bf16 %v1832_v49, %v1831_v60  ;;  %v5495_v49 = vld [vmem:[#allocation6_spill] sm:$0xff] }
 0x46c   :  { %v1857_v16 = vmax.f32 %v4731_v0, 0.0  ;;  %v1858_v38 = vmax.f32 %v4734_v13, 0.0  ;;  %v1892_v51 = vpack.c.bf16 %v1834_v2, %v1833_v44  ;;  %v1859_v22 = vmax.f32 %v4737_v63, 0.0 }
 0x46d   :  { %v1860_v17 = vmax.f32 %v4740_v59, 0.0  ;;  %v1861_v31 = vmax.f32 %v4743_v34, 0.0  ;;  %v1893_v18 = vpack.c.bf16 %v1836_v26, %v1835_v53  ;;  %v1862_v58 = vmax.f32 %v4746_v48, 0.0  ;;  %v5497_v26 = vld [vmem:[#allocation14_spill] sm:$0xff] }
 0x46e   :  { %v4862_v21 = vpack.c.bf16 %v1858_v38, %v1857_v16  ;;  %v1863_v41 = vmax.f32 %v4749_v33, 0.0  ;;  %v1864_v0 = vmax.f32 %v4752_v29, 0.0  ;;  %v1865_v13 = vmax.f32 %v4755_v9, 0.0 }
 0x46f   :  { %v4866_v50 = vpack.c.bf16 %v1860_v17, %v1859_v22  ;;  %v1866_v63 = vmax.f32 %v4758_v39, 0.0  ;;  %v4871_v59 = vpack.c.bf16 %v1862_v58, %v1861_v31  ;;  %v1867_v34 = vmax.f32 %v4761_v23, 0.0  ;;  %v5498_v17 = vld [vmem:[#allocation16_spill] sm:$0xff] }
 0x470   :  { %2667 = vmatmul.mubr.bf16.gmra.mrb[36].mxu0 %v1890_v30  ;;  %v1868_v14 = vmax.f32 %v4764_v57, 0.0  ;;  %v1869_v32 = vmax.f32 %v4767_v55, 0.0  ;;  %v4876_v48 = vpack.c.bf16 %v1864_v0, %v1863_v41  ;;  %v1870_v47 = vmax.f32 %v4770_v56, 0.0  ;;  %v5500_v41 = vld [vmem:[#allocation15_spill] sm:$0xff] }
 0x471   :  { %2670 = vmatprep.mubr.bf16.mxu0 %v1891_v27  ;;  %v4878_v33 = vpack.c.bf16 %v1866_v63, %v1865_v13  ;;  %v1871_v29 = vmax.f32 %v4773_v25, 0.0  ;;  %v1872_v9 = vmax.f32 %v4776_v20, 0.0  ;;  %v1873_v39 = vmax.f32 %v4779_v7, 0.0  ;;  %v5501_v13 = vld [vmem:[#allocation2_spill] sm:$0xff] }
 0x472   :  { %v4882_v45 = vpack.c.bf16 %v1868_v14, %v1867_v34  ;;  %v1874_v23 = vmax.f32 %v4782_v10, 0.0  ;;  %v4887_v1 = vpack.c.bf16 %v1870_v47, %v1869_v32  ;;  %v1875_v57 = vmax.f32 %v4785_v37, 0.0 }
 0x473   :  { %v1876_v55 = vmax.f32 %v4788_v52, 0.0  ;;  %v1877_v3 = vmax.f32 %v4791_v46, 0.0  ;;  %v4892_v43 = vpack.c.bf16 %v1872_v9, %v1871_v29  ;;  %v1878_v25 = vmax.f32 %v4794_v11, 0.0  ;;  %v5494_v11 = vld [vmem:[#allocation11_spill] sm:$0xff] }
 0x474   :  { %v4894_v56 = vpack.c.bf16 %v1874_v23, %v1873_v39  ;;  %v1879_v20 = vmax.f32 %v4797_v61, 0.0  ;;  %v1880_v7 = vmax.f32 %v4800_v5, 0.0  ;;  %v1881_v10 = vmax.f32 %v4803_v35, 0.0 }
 0x475   :  { %v4898_v40 = vpack.c.bf16 %v1876_v55, %v1875_v57  ;;  %v1882_v37 = vmax.f32 %v4806_v28, 0.0  ;;  %v4903_v52 = vpack.c.bf16 %v1878_v25, %v1877_v3  ;;  %v1883_v46 = vmax.f32 %v4809_v19, 0.0  ;;  %v5502_v57 = vld [vmem:[#allocation23_spill] sm:$0xff]  ;;  %v5503_v3 = vld [vmem:[#allocation28_spill] sm:$0xff] }
 0x476   :  { %v1885_v12 = vmax.f32 %v4812_v8, 0.0  ;;  %v1886_v60 = vmax.f32 %v4815_v6, 0.0  ;;  %v1707_v61 = vmul.f32 %v4622_v36, %v5494_v11  ;;  %v1708_v44 = vmul.f32 %v4622_v36, %v5495_v49  ;;  %v5496_v6 = vld [vmem:[#allocation9_spill] sm:$0xff] }
 0x477   :  { %v4912_v5 = vpack.c.bf16 %v1880_v7, %v1879_v20  ;;  %v4914_v35 = vpack.c.bf16 %v1882_v37, %v1881_v10  ;;  %v1837_v28 = vmax.f32 %v4846_v4, 0.0  ;;  %v1838_v2 = vmax.f32 %v4849_v24, 0.0  ;;  %v5504_v10 = vld [vmem:[#allocation29_spill] sm:$0xff] }
 0x478   :  { %2671 = vmatmul.mubr.bf16.gmra.mrb[40].mxu0 %v1892_v51  ;;  %v4918_v19 = vpack.c.bf16 %v1884_v54, %v1883_v46  ;;  %v4920_v8 = vpack.c.bf16 %v1886_v60, %v1885_v12  ;;  %v1709_v53 = vmul.f32 %v4622_v36, %v5496_v6  ;;  %v1710_v30 = vmul.f32 %v4622_v36, %v5497_v26  ;;  %v5505_v46 = vld [vmem:[#allocation30_spill] sm:$0xff] }
 0x479   :  { %2674 = vmatprep.mubr.bf16.mxu0 %v1893_v18  ;;  %v1839_v27 = vmax.f32 %v4852_v42, 0.0  ;;  %v1840_v16 = vmax.f32 %v4855_v62, 0.0  ;;  %v1777_v38 = vadd.f32 %v4627_v15, %v1707_v61  ;;  %v1778_v4 = vadd.f32 %v4627_v15, %v1708_v44  ;;  %v5499_v18 = vld [vmem:[#allocation12_spill] sm:$0xff] }
 0x47a   :  { %v1894_v51 = vpack.c.bf16 %v1838_v2, %v1837_v28  ;;  %v1779_v54 = vadd.f32 %v4627_v15, %v1709_v53  ;;  %v1780_v24 = vadd.f32 %v4627_v15, %v1710_v30  ;;  %v1711_v31 = vmul.f32 %v4622_v36, %v5498_v17  ;;  %v5506_v53 = vld [vmem:[#allocation31_spill] sm:$0xff]  ;;  %v5507_v30 = vld [vmem:[#allocation32_spill] sm:$0xff] }
 0x47b   :  { %v1895_v22 = vpack.c.bf16 %v1840_v16, %v1839_v27  ;;  %v1712_v42 = vmul.f32 %v4622_v36, %v5499_v18  ;;  %v1841_v58 = vmax.f32 %v1777_v38, 0.0  ;;  %v1842_v62 = vmax.f32 %v1778_v4, 0.0  ;;  %v5508_v4 = vld [vmem:[#allocation33_spill] sm:$0xff] }
 0x47c   :  { %v1713_v0 = vmul.f32 %v4622_v36, %v5500_v41  ;;  %v1714_v63 = vmul.f32 %v4622_v36, %v5501_v13  ;;  %v1843_v34 = vmax.f32 %v1779_v54, 0.0  ;;  %v1844_v14 = vmax.f32 %v1780_v24, 0.0  ;;  %v5509_v54 = vld [vmem:[#allocation34_spill] sm:$0xff] }
 0x47d   :  { %v1781_v32 = vadd.f32 %v4627_v15, %v1711_v31  ;;  %v1782_v47 = vadd.f32 %v4627_v15, %v1712_v42  ;;  %v1896_v29 = vpack.c.bf16 %v1842_v62, %v1841_v58  ;;  %v1715_v55 = vmul.f32 %v4622_v36, %v5502_v57 }
 0x47e   :  { %v1783_v9 = vadd.f32 %v4627_v15, %v1713_v0  ;;  %v1784_v39 = vadd.f32 %v4627_v15, %v1714_v63  ;;  %v1897_v23 = vpack.c.bf16 %v1844_v14, %v1843_v34  ;;  %v1716_v25 = vmul.f32 %v4622_v36, %v5503_v3 }
 0x47f   :  { %v1845_v20 = vmax.f32 %v1781_v32, 0.0  ;;  %v1846_v7 = vmax.f32 %v1782_v47, 0.0  ;;  %v1717_v37 = vmul.f32 %v4622_v36, %v5504_v10  ;;  %v1718_v12 = vmul.f32 %v4622_v36, %v5505_v46 }
 0x480   :  { %2675 = vmatmul.mubr.bf16.gmra.mrb[44].mxu0 %v1894_v51  ;;  %v1847_v60 = vmax.f32 %v1783_v9, 0.0  ;;  %v1848_v11 = vmax.f32 %v1784_v39, 0.0  ;;  %v1785_v61 = vadd.f32 %v4627_v15, %v1715_v55  ;;  %v1786_v49 = vadd.f32 %v4627_v15, %v1716_v25 }
 0x481   :  { %2678 = vmatprep.mubr.bf16.mxu0 %v1895_v22  ;;  %v1898_v44 = vpack.c.bf16 %v1846_v7, %v1845_v20  ;;  %v1787_v28 = vadd.f32 %v4627_v15, %v1717_v37  ;;  %v1788_v2 = vadd.f32 %v4627_v15, %v1718_v12  ;;  %v1719_v26 = vmul.f32 %v4622_v36, %v5506_v53 }
 0x482   :  { %v1899_v6 = vpack.c.bf16 %v1848_v11, %v1847_v60  ;;  %v1720_v27 = vmul.f32 %v4622_v36, %v5507_v30  ;;  %v1849_v16 = vmax.f32 %v1785_v61, 0.0  ;;  %v1850_v38 = vmax.f32 %v1786_v49, 0.0 }
 0x483   :  { %v1721_v51 = vmul.f32 %v4622_v36, %v5508_v4  ;;  %v1722_v24 = vmul.f32 %v4622_v36, %v5509_v54  ;;  %v1851_v22 = vmax.f32 %v1787_v28, 0.0  ;;  %v1852_v17 = vmax.f32 %v1788_v2, 0.0 }
 0x484   :  { %v1789_v31 = vadd.f32 %v4627_v15, %v1719_v26  ;;  %v1790_v18 = vadd.f32 %v4627_v15, %v1720_v27  ;;  %v1900_v42 = vpack.c.bf16 %v1850_v38, %v1849_v16 }
 0x485   :  { %v1791_v58 = vadd.f32 %v4627_v15, %v1721_v51  ;;  %v1792_v62 = vadd.f32 %v4627_v15, %v1722_v24  ;;  %v1901_v41 = vpack.c.bf16 %v1852_v17, %v1851_v22  ;;  %v4986_v15 = vld [vmem:[%s5252_s8] ss:$0 sm:$0xff] }
 0x486   :  { %v1853_v0 = vmax.f32 %v1789_v31, 0.0  ;;  %v1854_v13 = vmax.f32 %v1790_v18, 0.0 }
 0x487   :  { %v1855_v63 = vmax.f32 %v1791_v58, 0.0  ;;  %v1856_v34 = vmax.f32 %v1792_v62, 0.0 }
 0x488   :  { %2679 = vmatmul.mubr.bf16.gmra.mrb[48].mxu0 %v1896_v29  ;;  %v1902_v14 = vpack.c.bf16 %v1854_v13, %v1853_v0 }
 0x489   :  { %2682 = vmatprep.mubr.bf16.mxu0 %v1897_v23  ;;  %v1903_v36 = vpack.c.bf16 %v1856_v34, %v1855_v63 }
 0x490   :  { %2683 = vmatmul.mubr.bf16.gmra.mrb[52].mxu0 %v1898_v44 }
 0x491   :  { %2686 = vmatprep.mubr.bf16.mxu0 %v1899_v6 }
 0x498   :  { %2687 = vmatmul.mubr.bf16.gmra.mrb[56].mxu0 %v1900_v42 }
 0x499   :  { %2690 = vmatprep.mubr.bf16.mxu0 %v1901_v41 }
 0x4a0   :  { %2691 = vmatmul.mubr.bf16.gmra.mrb[60].mxu0 %v1902_v14 }
 0x4a1   :  { %2694 = vmatprep.mubr.bf16.mxu0 %v1903_v36 }
 0x4a8   :  { %2695 = vmatmul.mubr.bf16.gmra.mrb[64].mxu0 %v4862_v21 }
 0x4a9   :  { %2698 = vmatprep.mubr.bf16.mxu0 %v4866_v50 }
 0x4b0   :  { %2699 = vmatmul.mubr.bf16.gmra.mrb[68].mxu0 %v4871_v59 }
 0x4b1   :  { %2702 = vmatprep.mubr.bf16.mxu0 %v4876_v48 }
 0x4b8   :  { %2703 = vmatmul.mubr.bf16.gmra.mrb[72].mxu0 %v4878_v33 }
 0x4b9   :  { %2706 = vmatprep.mubr.bf16.mxu0 %v4882_v45 }
 0x4c0   :  { %2707 = vmatmul.mubr.bf16.gmra.mrb[76].mxu0 %v4887_v1 }
 0x4c1   :  { %2710 = vmatprep.mubr.bf16.mxu0 %v4892_v43 }
 0x4c8   :  { %2711 = vmatmul.mubr.bf16.gmra.mrb[80].mxu0 %v4894_v56 }
 0x4c9   :  { %2714 = vmatprep.mubr.bf16.mxu0 %v4898_v40 }
 0x4d0   :  { %2715 = vmatmul.mubr.bf16.gmra.mrb[84].mxu0 %v4903_v52 }
 0x4d1   :  { %2718 = vmatprep.mubr.bf16.mxu0 %v4912_v5 }
 0x4d8   :  { %2719 = vmatmul.mubr.bf16.gmra.mrb[88].mxu0 %v4914_v35 }
 0x4d9   :  { %2722 = vmatprep.mubr.bf16.mxu0 %v4918_v19 }
 0x4e0   :  { %2723 = vmatmul.mubr.bf16.gmra.mrb[92].mxu0 %v4920_v8 }
 0x53b   :  { %v2664_v21 = vpop.f32.mrb[32].mxu0 }
 0x53c   :  { %v2017_v50 = vadd.f32 %v2664_v21, %v4986_v15  ;;  %v2008_v59 = vpop.f32.mrb[33].mxu0 }
 0x53d   :  { %v2009_v48 = vadd.f32 %v4986_v15, %v2008_v59  ;;  %v2665_v33 = vpop.f32.mrb[34].mxu0 }
 0x53e   :  { %2265 = vst [vmem:[%s5253_s9 + $0x10] sm:$0xff] %v2017_v50  ;;  %v2020_v45 = vadd.f32 %v2665_v33, %v4986_v15  ;;  %v2011_v1 = vpop.f32.mrb[35].mxu0 }
 0x53f   :  { %2263 = vst [vmem:[%s5253_s9] sm:$0xff] %v2009_v48  ;;  %v2012_v43 = vadd.f32 %v4986_v15, %v2011_v1 }
 0x540   :  { %2266 = vst [vmem:[%s5253_s9 + $0x18] sm:$0xff] %v2020_v45 }
 0x541   :  { %2264 = vst [vmem:[%s5253_s9 + $0x8] sm:$0xff] %v2012_v43 }
 0x543   :  { %v2668_v56 = vpop.f32.mrb[36].mxu0 }
 0x544   :  { %v2033_v40 = vadd.f32 %v2668_v56, %v4986_v15  ;;  %v2024_v52 = vpop.f32.mrb[37].mxu0 }
 0x545   :  { %v2025_v5 = vadd.f32 %v4986_v15, %v2024_v52  ;;  %v2669_v35 = vpop.f32.mrb[38].mxu0 }
 0x546   :  { %2269 = vst [vmem:[%s5253_s9 + $0x30] sm:$0xff] %v2033_v40  ;;  %v2036_v19 = vadd.f32 %v2669_v35, %v4986_v15  ;;  %v2027_v8 = vpop.f32.mrb[39].mxu0 }
 0x547   :  { %2267 = vst [vmem:[%s5253_s9 + $0x20] sm:$0xff] %v2025_v5  ;;  %v2028_v32 = vadd.f32 %v4986_v15, %v2027_v8 }
 0x548   :  { %2270 = vst [vmem:[%s5253_s9 + $0x38] sm:$0xff] %v2036_v19 }
 0x549   :  { %2268 = vst [vmem:[%s5253_s9 + $0x28] sm:$0xff] %v2028_v32 }
 0x54b   :  { %v2672_v47 = vpop.f32.mrb[40].mxu0 }
 0x54c   :  { %v2049_v29 = vadd.f32 %v2672_v47, %v4986_v15  ;;  %v2040_v9 = vpop.f32.mrb[41].mxu0 }
 0x54d   :  { %v2041_v39 = vadd.f32 %v4986_v15, %v2040_v9  ;;  %v2673_v23 = vpop.f32.mrb[42].mxu0 }
 0x54e   :  { %2273 = vst [vmem:[%s5253_s9 + $0x50] sm:$0xff] %v2049_v29  ;;  %v2052_v57 = vadd.f32 %v2673_v23, %v4986_v15  ;;  %v2043_v55 = vpop.f32.mrb[43].mxu0 }
 0x54f   :  { %2271 = vst [vmem:[%s5253_s9 + $0x40] sm:$0xff] %v2041_v39  ;;  %v2044_v3 = vadd.f32 %v4986_v15, %v2043_v55 }
 0x550   :  { %2274 = vst [vmem:[%s5253_s9 + $0x58] sm:$0xff] %v2052_v57 }
 0x551   :  { %2272 = vst [vmem:[%s5253_s9 + $0x48] sm:$0xff] %v2044_v3 }
 0x553   :  { %v2676_v25 = vpop.f32.mrb[44].mxu0 }
 0x554   :  { %v2065_v20 = vadd.f32 %v2676_v25, %v4986_v15  ;;  %v2056_v7 = vpop.f32.mrb[45].mxu0 }
 0x555   :  { %v2057_v10 = vadd.f32 %v4986_v15, %v2056_v7  ;;  %v2677_v37 = vpop.f32.mrb[46].mxu0 }
 0x556   :  { %2277 = vst [vmem:[%s5253_s9 + $0x70] sm:$0xff] %v2065_v20  ;;  %v2068_v46 = vadd.f32 %v2677_v37, %v4986_v15  ;;  %v2059_v12 = vpop.f32.mrb[47].mxu0 }
 0x557   :  { %2275 = vst [vmem:[%s5253_s9 + $0x60] sm:$0xff] %v2057_v10  ;;  %v2060_v60 = vadd.f32 %v4986_v15, %v2059_v12 }
 0x558   :  { %2278 = vst [vmem:[%s5253_s9 + $0x78] sm:$0xff] %v2068_v46 }
 0x559   :  { %2276 = vst [vmem:[%s5253_s9 + $0x68] sm:$0xff] %v2060_v60 }
 0x55b   :  { %v2680_v11 = vpop.f32.mrb[48].mxu0 }
 0x55c   :  { %v2081_v61 = vadd.f32 %v2680_v11, %v4986_v15  ;;  %v2072_v49 = vpop.f32.mrb[49].mxu0 }
 0x55d   :  { %v2073_v44 = vadd.f32 %v4986_v15, %v2072_v49  ;;  %v2681_v28 = vpop.f32.mrb[50].mxu0 }
 0x55e   :  { %2281 = vst [vmem:[%s5253_s9 + $0x90] sm:$0xff] %v2081_v61  ;;  %v2084_v2 = vadd.f32 %v2681_v28, %v4986_v15  ;;  %v2075_v6 = vpop.f32.mrb[51].mxu0 }
 0x55f   :  { %2279 = vst [vmem:[%s5253_s9 + $0x80] sm:$0xff] %v2073_v44  ;;  %v2076_v53 = vadd.f32 %v4986_v15, %v2075_v6 }
 0x560   :  { %2282 = vst [vmem:[%s5253_s9 + $0x98] sm:$0xff] %v2084_v2 }
 0x561   :  { %2280 = vst [vmem:[%s5253_s9 + $0x88] sm:$0xff] %v2076_v53 }
 0x563   :  { %v2684_v26 = vpop.f32.mrb[52].mxu0 }
 0x564   :  { %v2097_v30 = vadd.f32 %v2684_v26, %v4986_v15  ;;  %v2088_v27 = vpop.f32.mrb[53].mxu0 }
 0x565   :  { %v2089_v16 = vadd.f32 %v4986_v15, %v2088_v27  ;;  %v2685_v38 = vpop.f32.mrb[54].mxu0 }
 0x566   :  { %2285 = vst [vmem:[%s5253_s9 + $0xb0] sm:$0xff] %v2097_v30  ;;  %v2100_v4 = vadd.f32 %v2685_v38, %v4986_v15  ;;  %v2091_v51 = vpop.f32.mrb[55].mxu0 }
 0x567   :  { %2283 = vst [vmem:[%s5253_s9 + $0xa0] sm:$0xff] %v2089_v16  ;;  %v2092_v54 = vadd.f32 %v4986_v15, %v2091_v51 }
 0x568   :  { %2286 = vst [vmem:[%s5253_s9 + $0xb8] sm:$0xff] %v2100_v4 }
 0x569   :  { %2284 = vst [vmem:[%s5253_s9 + $0xa8] sm:$0xff] %v2092_v54 }
 0x56b   :  { %v2688_v24 = vpop.f32.mrb[56].mxu0 }
 0x56c   :  { %v2113_v22 = vadd.f32 %v2688_v24, %v4986_v15  ;;  %v2104_v17 = vpop.f32.mrb[57].mxu0 }
 0x56d   :  { %v2105_v31 = vadd.f32 %v4986_v15, %v2104_v17  ;;  %v2689_v18 = vpop.f32.mrb[58].mxu0 }
 0x56e   :  { %2289 = vst [vmem:[%s5253_s9 + $0xd0] sm:$0xff] %v2113_v22  ;;  %v2116_v42 = vadd.f32 %v2689_v18, %v4986_v15  ;;  %v2107_v58 = vpop.f32.mrb[59].mxu0 }
 0x56f   :  { %2287 = vst [vmem:[%s5253_s9 + $0xc0] sm:$0xff] %v2105_v31  ;;  %v2108_v62 = vadd.f32 %v4986_v15, %v2107_v58 }
 0x570   :  { %2290 = vst [vmem:[%s5253_s9 + $0xd8] sm:$0xff] %v2116_v42 }
 0x571   :  { %2288 = vst [vmem:[%s5253_s9 + $0xc8] sm:$0xff] %v2108_v62 }
 0x573   :  { %v2692_v41 = vpop.f32.mrb[60].mxu0 }
 0x574   :  { %v2129_v0 = vadd.f32 %v2692_v41, %v4986_v15  ;;  %v2120_v13 = vpop.f32.mrb[61].mxu0 }
 0x575   :  { %v2121_v63 = vadd.f32 %v4986_v15, %v2120_v13  ;;  %v2693_v34 = vpop.f32.mrb[62].mxu0 }
 0x576   :  { %2293 = vst [vmem:[%s5253_s9 + $0xf0] sm:$0xff] %v2129_v0  ;;  %v2132_v14 = vadd.f32 %v2693_v34, %v4986_v15  ;;  %v2123_v36 = vpop.f32.mrb[63].mxu0 }
 0x577   :  { %2291 = vst [vmem:[%s5253_s9 + $0xe0] sm:$0xff] %v2121_v63  ;;  %v2124_v21 = vadd.f32 %v4986_v15, %v2123_v36 }
 0x578   :  { %2294 = vst [vmem:[%s5253_s9 + $0xf8] sm:$0xff] %v2132_v14 }
 0x579   :  { %2292 = vst [vmem:[%s5253_s9 + $0xe8] sm:$0xff] %v2124_v21 }
 0x57b   :  { %v2696_v50 = vpop.f32.mrb[64].mxu0 }
 0x57c   :  { %v2145_v59 = vadd.f32 %v2696_v50, %v4986_v15  ;;  %v2136_v48 = vpop.f32.mrb[65].mxu0 }
 0x57d   :  { %v2137_v33 = vadd.f32 %v4986_v15, %v2136_v48  ;;  %v2697_v45 = vpop.f32.mrb[66].mxu0 }
 0x57e   :  { %2297 = vst [vmem:[%s5253_s9 + $0x110] sm:$0xff] %v2145_v59  ;;  %v2148_v1 = vadd.f32 %v2697_v45, %v4986_v15  ;;  %v2139_v43 = vpop.f32.mrb[67].mxu0 }
 0x57f   :  { %2295 = vst [vmem:[%s5253_s9 + $0x100] sm:$0xff] %v2137_v33  ;;  %v2140_v56 = vadd.f32 %v4986_v15, %v2139_v43 }
 0x580   :  { %2298 = vst [vmem:[%s5253_s9 + $0x118] sm:$0xff] %v2148_v1 }
 0x581   :  { %2296 = vst [vmem:[%s5253_s9 + $0x108] sm:$0xff] %v2140_v56 }
 0x583   :  { %v2700_v40 = vpop.f32.mrb[68].mxu0 }
 0x584   :  { %v2161_v52 = vadd.f32 %v2700_v40, %v4986_v15  ;;  %v2152_v5 = vpop.f32.mrb[69].mxu0 }
 0x585   :  { %v2153_v35 = vadd.f32 %v4986_v15, %v2152_v5  ;;  %v2701_v19 = vpop.f32.mrb[70].mxu0 }
 0x586   :  { %2301 = vst [vmem:[%s5253_s9 + $0x130] sm:$0xff] %v2161_v52  ;;  %v2164_v8 = vadd.f32 %v2701_v19, %v4986_v15  ;;  %v2155_v32 = vpop.f32.mrb[71].mxu0 }
 0x587   :  { %2299 = vst [vmem:[%s5253_s9 + $0x120] sm:$0xff] %v2153_v35  ;;  %v2156_v47 = vadd.f32 %v4986_v15, %v2155_v32 }
 0x588   :  { %2302 = vst [vmem:[%s5253_s9 + $0x138] sm:$0xff] %v2164_v8 }
 0x589   :  { %2300 = vst [vmem:[%s5253_s9 + $0x128] sm:$0xff] %v2156_v47 }
 0x58b   :  { %v2704_v29 = vpop.f32.mrb[72].mxu0 }
 0x58c   :  { %v2177_v9 = vadd.f32 %v2704_v29, %v4986_v15  ;;  %v2168_v39 = vpop.f32.mrb[73].mxu0 }
 0x58d   :  { %v2169_v23 = vadd.f32 %v4986_v15, %v2168_v39  ;;  %v2705_v57 = vpop.f32.mrb[74].mxu0 }
 0x58e   :  { %2305 = vst [vmem:[%s5253_s9 + $0x150] sm:$0xff] %v2177_v9  ;;  %v2180_v55 = vadd.f32 %v2705_v57, %v4986_v15  ;;  %v2171_v3 = vpop.f32.mrb[75].mxu0 }
 0x58f   :  { %2303 = vst [vmem:[%s5253_s9 + $0x140] sm:$0xff] %v2169_v23  ;;  %v2172_v25 = vadd.f32 %v4986_v15, %v2171_v3 }
 0x590   :  { %2306 = vst [vmem:[%s5253_s9 + $0x158] sm:$0xff] %v2180_v55 }
 0x591   :  { %2304 = vst [vmem:[%s5253_s9 + $0x148] sm:$0xff] %v2172_v25 }
 0x593   :  { %v2708_v20 = vpop.f32.mrb[76].mxu0 }
 0x594   :  { %v2193_v7 = vadd.f32 %v2708_v20, %v4986_v15  ;;  %v2184_v10 = vpop.f32.mrb[77].mxu0 }
 0x595   :  { %v2185_v37 = vadd.f32 %v4986_v15, %v2184_v10  ;;  %v2709_v46 = vpop.f32.mrb[78].mxu0 }
 0x596   :  { %2309 = vst [vmem:[%s5253_s9 + $0x170] sm:$0xff] %v2193_v7  ;;  %v2196_v12 = vadd.f32 %v2709_v46, %v4986_v15  ;;  %v2187_v60 = vpop.f32.mrb[79].mxu0 }
 0x597   :  { %2307 = vst [vmem:[%s5253_s9 + $0x160] sm:$0xff] %v2185_v37  ;;  %v2188_v11 = vadd.f32 %v4986_v15, %v2187_v60 }
 0x598   :  { %2310 = vst [vmem:[%s5253_s9 + $0x178] sm:$0xff] %v2196_v12 }
 0x599   :  { %2308 = vst [vmem:[%s5253_s9 + $0x168] sm:$0xff] %v2188_v11 }
 0x59b   :  { %v2712_v61 = vpop.f32.mrb[80].mxu0 }
 0x59c   :  { %v2209_v49 = vadd.f32 %v2712_v61, %v4986_v15  ;;  %v2200_v44 = vpop.f32.mrb[81].mxu0 }
 0x59d   :  { %v2201_v28 = vadd.f32 %v4986_v15, %v2200_v44  ;;  %v2713_v2 = vpop.f32.mrb[82].mxu0 }
 0x59e   :  { %2313 = vst [vmem:[%s5253_s9 + $0x190] sm:$0xff] %v2209_v49  ;;  %v2212_v6 = vadd.f32 %v2713_v2, %v4986_v15  ;;  %v2203_v53 = vpop.f32.mrb[83].mxu0 }
 0x59f   :  { %2311 = vst [vmem:[%s5253_s9 + $0x180] sm:$0xff] %v2201_v28  ;;  %v2204_v26 = vadd.f32 %v4986_v15, %v2203_v53 }
 0x5a0   :  { %2314 = vst [vmem:[%s5253_s9 + $0x198] sm:$0xff] %v2212_v6 }
 0x5a1   :  { %2312 = vst [vmem:[%s5253_s9 + $0x188] sm:$0xff] %v2204_v26 }
 0x5a3   :  { %v2716_v30 = vpop.f32.mrb[84].mxu0 }
 0x5a4   :  { %v2225_v27 = vadd.f32 %v2716_v30, %v4986_v15  ;;  %v2216_v16 = vpop.f32.mrb[85].mxu0 }
 0x5a5   :  { %v2217_v38 = vadd.f32 %v4986_v15, %v2216_v16  ;;  %v2717_v4 = vpop.f32.mrb[86].mxu0 }
 0x5a6   :  { %2317 = vst [vmem:[%s5253_s9 + $0x1b0] sm:$0xff] %v2225_v27  ;;  %v2228_v51 = vadd.f32 %v2717_v4, %v4986_v15  ;;  %v2219_v54 = vpop.f32.mrb[87].mxu0 }
 0x5a7   :  { %2315 = vst [vmem:[%s5253_s9 + $0x1a0] sm:$0xff] %v2217_v38  ;;  %v2220_v24 = vadd.f32 %v4986_v15, %v2219_v54 }
 0x5a8   :  { %2318 = vst [vmem:[%s5253_s9 + $0x1b8] sm:$0xff] %v2228_v51 }
 0x5a9   :  { %2316 = vst [vmem:[%s5253_s9 + $0x1a8] sm:$0xff] %v2220_v24 }
 0x5ab   :  { %v2720_v22 = vpop.f32.mrb[88].mxu0 }
 0x5ac   :  { %v2241_v17 = vadd.f32 %v2720_v22, %v4986_v15  ;;  %v2232_v31 = vpop.f32.mrb[89].mxu0 }
 0x5ad   :  { %v2233_v18 = vadd.f32 %v4986_v15, %v2232_v31  ;;  %v2721_v42 = vpop.f32.mrb[90].mxu0 }
 0x5ae   :  { %2321 = vst [vmem:[%s5253_s9 + $0x1d0] sm:$0xff] %v2241_v17  ;;  %v2244_v58 = vadd.f32 %v2721_v42, %v4986_v15  ;;  %v2235_v62 = vpop.f32.mrb[91].mxu0 }
 0x5af   :  { %2319 = vst [vmem:[%s5253_s9 + $0x1c0] sm:$0xff] %v2233_v18  ;;  %v2236_v41 = vadd.f32 %v4986_v15, %v2235_v62 }
 0x5b0   :  { %2322 = vst [vmem:[%s5253_s9 + $0x1d8] sm:$0xff] %v2244_v58 }
 0x5b1   :  { %2320 = vst [vmem:[%s5253_s9 + $0x1c8] sm:$0xff] %v2236_v41 }
 0x5b3   :  { %v2724_v0 = vpop.f32.mrb[92].mxu0 }
 0x5b4   :  { %v2257_v13 = vadd.f32 %v2724_v0, %v4986_v15  ;;  %v2248_v63 = vpop.f32.mrb[93].mxu0 }
 0x5b5   :  { %v2249_v34 = vadd.f32 %v4986_v15, %v2248_v63  ;;  %v2725_v14 = vpop.f32.mrb[94].mxu0 }
 0x5b6   :  { %2325 = vst [vmem:[%s5253_s9 + $0x1f0] sm:$0xff] %v2257_v13  ;;  %v2260_v36 = vadd.f32 %v2725_v14, %v4986_v15  ;;  %v2251_v21 = vpop.f32.mrb[95].mxu0 }
 0x5b7   :  { %2323 = vst [vmem:[%s5253_s9 + $0x1e0] sm:$0xff] %v2249_v34  ;;  %v2252_v50 = vadd.f32 %v4986_v15, %v2251_v21 }
 0x5b8   :  { %2326 = vst [vmem:[%s5253_s9 + $0x1f8] sm:$0xff] %v2260_v36 }
 0x5b9   :  { %2324 = vst [vmem:[%s5253_s9 + $0x1e8] sm:$0xff] %v2252_v50 }

</bundles_post_ra>
